<compile_context>
chip_gen: v6e
topology: v6e:2x2x1
jax: 0.10.0
libtpu: 0.0.40
codegen_flags: <defaults>
</compile_context>

<pallas_src>
import jax
import jax.numpy as jnp
from jax import lax
from jax.experimental import pallas as pl
from jax.experimental.pallas import tpu as pltpu


def _ce_tile_kernel(x_ref, y_ref, sum_ref, cnt_ref, sum_vec, cnt_vec):
    # x_ref:   (TM, C) logits tile in VMEM (original dtype, streamed as-is)
    # y_ref:   (TM, 1) int32 labels tile (negative / >= C  => ignored row)
    # sum_ref: (1, 8, 128) f32 per-split NLL-sum partial (resident across steps)
    # cnt_ref: (1, 8, 128) f32 per-split valid-row-count partial
    # sum_vec, cnt_vec: (TM, 1) f32 vector accumulators (scratch)
    i = pl.program_id(1)                      # step axis within this split

    @pl.when(i == 0)
    def _init():
        sum_vec[...] = jnp.zeros_like(sum_vec)
        cnt_vec[...] = jnp.zeros_like(cnt_vec)

    x = x_ref[...]                            # (TM, C), original dtype
    y = y_ref[...]                            # (TM, 1) int32
    num_classes = x.shape[-1]
    valid = jnp.logical_and(y >= 0, y < num_classes)          # (TM, 1)

    # Pick the label logit from the raw-dtype tile: (1, C) iota broadcast
    # against (TM, 1) labels; sum-of-one-hot is an exact selection.
    col = lax.broadcasted_iota(jnp.int32, (1, num_classes), 1)  # (1, C)
    picked = jnp.sum(
        jnp.where(col == y, x, jnp.zeros_like(x)),
        axis=-1, keepdims=True).astype(jnp.float32)             # (TM, 1)

    # Numerically-stable log-sum-exp in f32 (bf16 exp path possible on
    # v6e/v7x, kept f32 here to match the reference bit-for-bit-ish).
    xf = x.astype(jnp.float32)
    m = jnp.max(xf, axis=-1, keepdims=True)                     # (TM, 1)
    lse = jnp.log(jnp.sum(jnp.exp(xf - m), axis=-1, keepdims=True))

    nll = jnp.where(valid, (m + lse) - picked, 0.0)             # (TM, 1)

    sum_vec[...] += nll
    cnt_vec[...] += valid.astype(jnp.float32)

    @pl.when(i == pl.num_programs(1) - 1)
    def _finalize():
        # One cross-sublane reduce per split; broadcast into the lane-dense
        # (8, 128) output block (wrapper reads [:, 0, 0]).
        sum_ref[...] = jnp.broadcast_to(
            jnp.sum(sum_vec[...], keepdims=True), sum_ref.shape)
        cnt_ref[...] = jnp.broadcast_to(
            jnp.sum(cnt_vec[...], keepdims=True), cnt_ref.shape)


def cross_entropy_loss(x, y, *, tile_rows=None, num_splits=2,
                       vmem_budget_bytes=None):
    """Equivalent of nn.CrossEntropyLoss()(x, y) for x:(N,C) logits, y:(N,) int.

    Labels < 0 or >= C are ignored; mean is over valid rows (NaN if none,
    matching PyTorch).  `num_splits` shards the batch over TensorCores
    (leading 'parallel' grid axis): ~2x on v7x, near-neutral on v5e/v6e.
    """
    n, c = x.shape
    itemsize = jnp.dtype(x.dtype).itemsize
    # dtype-native sublane multiple: 8 for f32, 16 for bf16, 32 for int8/fp8
    row_mult = max(8, 32 // itemsize)

    # Generation-aware VMEM budgets (v7x: 64 MiB/TC, v5e/v6e: 128 MiB).
    try:
        vmem_cap = int(pltpu.get_tpu_info().vmem_capacity_bytes)
    except Exception:  # interpret mode / older API: assume the small (v7x) part
        vmem_cap = 64 * 1024 * 1024
    vmem_limit = min(vmem_cap // 2, 64 * 1024 * 1024)   # 64 MiB v5e/v6e, 32 MiB v7x
    if vmem_budget_bytes is None:
        vmem_budget_bytes = vmem_limit // 2              # headroom for compiler temps

    num_splits = max(1, int(num_splits))

    if tile_rows is None:
        # Working set per row: 2x double-buffered input tile + ~4 f32 (TM, C) temps.
        per_row_bytes = c * (2 * itemsize + 4 * 4)
        tm = max(row_mult, vmem_budget_bytes // per_row_bytes)
        # Keep at least one tile per split so every TensorCore has work.
        rows_per_split = pl.cdiv(n, num_splits)
        tm = min(tm, pl.cdiv(rows_per_split, row_mult) * row_mult)
    else:
        tm = max(row_mult, int(tile_rows))
    tm = pl.cdiv(tm, row_mult) * row_mult                # round up to native tile

    steps = max(1, pl.cdiv(n, num_splits * tm))
    n_pad = num_splits * steps * tm

    y2 = y.reshape(n, 1).astype(jnp.int32)
    if n_pad != n:
        x = jnp.pad(x, ((0, n_pad - n), (0, 0)))
        y2 = jnp.pad(y2, ((0, n_pad - n), (0, 0)), constant_values=-1)  # ignored

    cost = pl.CostEstimate(
        flops=6 * n_pad * c,
        transcendentals=n_pad * c,
        bytes_accessed=n_pad * c * itemsize + n_pad * 4 + num_splits * 2 * 8 * 128 * 4,
    )

    def x_map(s, i):
        return (s * steps + i, 0)

    def y_map(s, i):
        return (s * steps + i, 0)

    def out_map(s, i):
        return (s, 0, 0)

    sums, cnts = pl.pallas_call(
        _ce_tile_kernel,
        out_shape=(jax.ShapeDtypeStruct((num_splits, 8, 128), jnp.float32),
                   jax.ShapeDtypeStruct((num_splits, 8, 128), jnp.float32)),
        grid_spec=pltpu.PrefetchScalarGridSpec(
            num_scalar_prefetch=0,
            grid=(num_splits, steps),
            in_specs=[
                pl.BlockSpec((tm, c), x_map),
                pl.BlockSpec((tm, 1), y_map),
            ],
            out_specs=[
                pl.BlockSpec((1, 8, 128), out_map),
                pl.BlockSpec((1, 8, 128), out_map),
            ],
            scratch_shapes=[
                pltpu.VMEM((tm, 1), jnp.float32),   # running per-row NLL sum
                pltpu.VMEM((tm, 1), jnp.float32),   # running per-row valid count
            ],
        ),
        compiler_params=pltpu.CompilerParams(
            dimension_semantics=("parallel", "arbitrary"),
            vmem_limit_bytes=vmem_limit,
        ),
        cost_estimate=cost,
    )(x, y2)

    total_sum = jnp.sum(sums[:, 0, 0])
    total_cnt = jnp.sum(cnts[:, 0, 0])
    return total_sum / total_cnt


def classification_loss_forward(output, labels):
    """Mirrors ClassificationLoss.forward: output/labels are tuples/lists.

    Returns (loss_val, loss_all) where loss_all = [loss_val].
    (torch.max(x, 1) classification_pred is computed but discarded in the
    reference, so it is omitted here.)
    """
    x = output[0]
    y = labels[0]
    loss_classify = cross_entropy_loss(x, y)     # auto tile sizing (no tiny tiles)
    loss_all = [loss_classify]
    loss_val = loss_all[0]
    return loss_val, loss_all


def _ref_cross_entropy(x, y):
    logp = jax.nn.log_softmax(x.astype(jnp.float32), axis=-1)
    return -jnp.mean(logp[jnp.arange(x.shape[0]), y])


if __name__ == "__main__":
    key = jax.random.PRNGKey(0)
    kx, ky, kx2, ky2, kx3, ky3 = jax.random.split(key, 6)

    # case 1: f32 logits, auto tiling, 2-way split (one tile per split)
    N, C = 512, 128
    x = jax.random.normal(kx, (N, C), dtype=jnp.float32)
    y = jax.random.randint(ky, (N,), 0, C, dtype=jnp.int32)
    loss_val, loss_all = classification_loss_forward((x,), (y,))
    loss_val = jax.block_until_ready(loss_val)
    assert jnp.allclose(loss_val, _ref_cross_entropy(x, y), atol=1e-5), loss_val

    # case 2: ragged bf16 batch (padded tail masked out of the mean)
    N2, C2 = 300, 64
    x2 = jax.random.normal(kx2, (N2, C2), dtype=jnp.bfloat16)
    y2 = jax.random.randint(ky2, (N2,), 0, C2, dtype=jnp.int32)
    loss2 = jax.block_until_ready(cross_entropy_loss(x2, y2))
    assert jnp.allclose(loss2, _ref_cross_entropy(x2, y2), atol=1e-4), loss2

    # case 3: explicit small-ish tile forces multi-step accumulation per split
    N3, C3 = 512, 96
    x3 = jax.random.normal(kx3, (N3, C3), dtype=jnp.float32)
    y3 = jax.random.randint(ky3, (N3,), 0, C3, dtype=jnp.int32)
    loss3 = jax.block_until_ready(cross_entropy_loss(x3, y3, tile_rows=64))
    assert jnp.allclose(loss3, _ref_cross_entropy(x3, y3), atol=1e-5), loss3

    print("KERNEL_OK")
</pallas_src>

<mosaic_0001>
module attributes {stable_mosaic.version = 11 : i64} {
  func.func @_ce_tile_kernel(%arg0: i32, %arg1: i32, %arg2: memref<256x128xf32, #tpu.memory_space<vmem>>, %arg3: memref<256x1xi32, #tpu.memory_space<vmem>>, %arg4: memref<1x8x128xf32, #tpu.memory_space<vmem>>, %arg5: memref<1x8x128xf32, #tpu.memory_space<vmem>>, %arg6: memref<256x1xf32, #tpu.memory_space<vmem>>, %arg7: memref<256x1xf32, #tpu.memory_space<vmem>>) attributes {dimension_semantics = [#tpu.dimension_semantics<parallel>, #tpu.dimension_semantics<arbitrary>], iteration_bounds = array<i64: 2, 1>, scalar_prefetch = 0 : i64, scratch_operands = 2 : i64, tpu.core_type = #tpu.core_type<tc>, window_params = [{transform_indices = @transform_0, window_bounds = array<i64: 256, 128>}, {transform_indices = @transform_1, window_bounds = array<i64: 256, 1>}, {transform_indices = @transform_2, window_bounds = array<i64: 1, 8, 128>}, {transform_indices = @transform_3, window_bounds = array<i64: 1, 8, 128>}]} {
    %c0_i32 = arith.constant 0 : i32
    %0 = arith.cmpi eq, %arg1, %c0_i32 : i32
    %1 = arith.extui %0 : i1 to i32
    %c0_i32_0 = arith.constant 0 : i32
    %2 = arith.cmpi ne, %1, %c0_i32_0 : i32
    scf.if %2 {
      %cst_19 = arith.constant 0.000000e+00 : f32
      %41 = vector.broadcast %cst_19 : f32 to vector<256x1xf32>
      %c0_20 = arith.constant 0 : index
      %c0_21 = arith.constant 0 : index
      %42 = vector.load %arg6[%c0_20, %c0_21] : memref<256x1xf32, #tpu.memory_space<vmem>>, vector<256x1xf32>
      tpu.vector_store %arg6[%c0_20, %c0_21], %41 {strides = array<i32>} : memref<256x1xf32, #tpu.memory_space<vmem>>, vector<256x1xf32>,
      %cst_22 = arith.constant 0.000000e+00 : f32
      %43 = vector.broadcast %cst_22 : f32 to vector<256x1xf32>
      %c0_23 = arith.constant 0 : index
      %c0_24 = arith.constant 0 : index
      %44 = vector.load %arg7[%c0_23, %c0_24] : memref<256x1xf32, #tpu.memory_space<vmem>>, vector<256x1xf32>
      tpu.vector_store %arg7[%c0_23, %c0_24], %43 {strides = array<i32>} : memref<256x1xf32, #tpu.memory_space<vmem>>, vector<256x1xf32>,
    } else {
    }
    %c0 = arith.constant 0 : index
    %c0_1 = arith.constant 0 : index
    %3 = vector.load %arg2[%c0, %c0_1] : memref<256x128xf32, #tpu.memory_space<vmem>>, vector<256x128xf32>
    %c0_2 = arith.constant 0 : index
    %c0_3 = arith.constant 0 : index
    %4 = vector.load %arg3[%c0_2, %c0_3] : memref<256x1xi32, #tpu.memory_space<vmem>>, vector<256x1xi32>
    %c0_i32_4 = arith.constant 0 : i32
    %5 = vector.broadcast %c0_i32_4 : i32 to vector<256x1xi32>
    %6 = arith.cmpi sge, %4, %5 : vector<256x1xi32>
    %c128_i32 = arith.constant 128 : i32
    %7 = vector.broadcast %c128_i32 : i32 to vector<256x1xi32>
    %8 = arith.cmpi slt, %4, %7 : vector<256x1xi32>
    %9 = arith.andi %6, %8 : vector<256x1xi1>
    %10 = tpu.iota {dimensions = array<i32: 1>} : vector<1x128xi32>
    %11 = vector.broadcast %10 : vector<1x128xi32> to vector<256x128xi32>
    %12 = vector.broadcast %4 : vector<256x1xi32> to vector<256x128xi32>
    %13 = arith.cmpi eq, %11, %12 : vector<256x128xi32>
    %cst = arith.constant 0.000000e+00 : f32
    %14 = vector.broadcast %cst : f32 to vector<256x128xf32>
    %15 = arith.select %13, %3, %14 : vector<256x128xi1>, vector<256x128xf32>
    %cst_5 = arith.constant dense<0.000000e+00> : vector<256xf32>
    %16 = vector.multi_reduction <add>, %15, %cst_5 [1] : vector<256x128xf32> to vector<256xf32>
    %17 = vector.shape_cast %16 : vector<256xf32> to vector<256x1xf32>
    %cst_6 = arith.constant dense<0xFF800000> : vector<256xf32>
    %18 = vector.multi_reduction <maximumf>, %3, %cst_6 [1] : vector<256x128xf32> to vector<256xf32>
    %19 = vector.shape_cast %18 : vector<256xf32> to vector<256x1xf32>
    %20 = vector.broadcast %19 : vector<256x1xf32> to vector<256x128xf32>
    %21 = arith.subf %3, %20 : vector<256x128xf32>
    %22 = math.exp %21 : vector<256x128xf32>
    %cst_7 = arith.constant dense<0.000000e+00> : vector<256xf32>
    %23 = vector.multi_reduction <add>, %22, %cst_7 [1] : vector<256x128xf32> to vector<256xf32>
    %24 = vector.shape_cast %23 : vector<256xf32> to vector<256x1xf32>
    %25 = math.log %24 : vector<256x1xf32>
    %26 = arith.addf %19, %25 : vector<256x1xf32>
    %27 = arith.subf %26, %17 : vector<256x1xf32>
    %cst_8 = arith.constant 0.000000e+00 : f32
    %28 = vector.broadcast %cst_8 : f32 to vector<256x1xf32>
    %29 = arith.select %9, %27, %28 : vector<256x1xi1>, vector<256x1xf32>
    %c0_9 = arith.constant 0 : index
    %c0_10 = arith.constant 0 : index
    %30 = vector.load %arg6[%c0_9, %c0_10] : memref<256x1xf32, #tpu.memory_space<vmem>>, vector<256x1xf32>
    %31 = arith.addf %30, %29 : vector<256x1xf32>
    %c0_11 = arith.constant 0 : index
    %c0_12 = arith.constant 0 : index
    %32 = vector.load %arg6[%c0_11, %c0_12] : memref<256x1xf32, #tpu.memory_space<vmem>>, vector<256x1xf32>
    tpu.vector_store %arg6[%c0_11, %c0_12], %31 {strides = array<i32>} : memref<256x1xf32, #tpu.memory_space<vmem>>, vector<256x1xf32>,
    %c0_13 = arith.constant 0 : index
    %c0_14 = arith.constant 0 : index
    %33 = vector.load %arg7[%c0_13, %c0_14] : memref<256x1xf32, #tpu.memory_space<vmem>>, vector<256x1xf32>
    %34 = arith.extui %9 : vector<256x1xi1> to vector<256x1xi32>
    %35 = arith.sitofp %34 : vector<256x1xi32> to vector<256x1xf32>
    %36 = arith.addf %33, %35 : vector<256x1xf32>
    %c0_15 = arith.constant 0 : index
    %c0_16 = arith.constant 0 : index
    %37 = vector.load %arg7[%c0_15, %c0_16] : memref<256x1xf32, #tpu.memory_space<vmem>>, vector<256x1xf32>
    tpu.vector_store %arg7[%c0_15, %c0_16], %36 {strides = array<i32>} : memref<256x1xf32, #tpu.memory_space<vmem>>, vector<256x1xf32>,
    %c0_i32_17 = arith.constant 0 : i32
    %38 = arith.cmpi eq, %arg1, %c0_i32_17 : i32
    %39 = arith.extui %38 : i1 to i32
    %c0_i32_18 = arith.constant 0 : i32
    %40 = arith.cmpi ne, %39, %c0_i32_18 : i32
    scf.if %40 {
      %c0_19 = arith.constant 0 : index
      %c0_20 = arith.constant 0 : index
      %41 = vector.load %arg6[%c0_19, %c0_20] : memref<256x1xf32, #tpu.memory_space<vmem>>, vector<256x1xf32>
      %42 = vector.shape_cast %41 : vector<256x1xf32> to vector<1x256x1xf32>
      %cst_21 = arith.constant dense<0.000000e+00> : vector<1xf32>
      %43 = vector.multi_reduction <add>, %42, %cst_21 [1, 2] : vector<1x256x1xf32> to vector<1xf32>
      %44 = vector.shape_cast %43 : vector<1xf32> to vector<1x1x1xf32>
      %45 = vector.extract %44[0, 0, 0] : f32 from vector<1x1x1xf32>
      %46 = vector.broadcast %45 : f32 to vector<1x1xf32>
      %47 = vector.shape_cast %46 : vector<1x1xf32> to vector<1x1x1xf32>
      %48 = vector.broadcast %47 : vector<1x1x1xf32> to vector<1x8x128xf32>
      %c0_22 = arith.constant 0 : index
      %c0_23 = arith.constant 0 : index
      %c0_24 = arith.constant 0 : index
      %49 = vector.load %arg4[%c0_22, %c0_23, %c0_24] : memref<1x8x128xf32, #tpu.memory_space<vmem>>, vector<1x8x128xf32>
      tpu.vector_store %arg4[%c0_22, %c0_23, %c0_24], %48 {strides = array<i32>} : memref<1x8x128xf32, #tpu.memory_space<vmem>>, vector<1x8x128xf32>,
      %c0_25 = arith.constant 0 : index
      %c0_26 = arith.constant 0 : index
      %50 = vector.load %arg7[%c0_25, %c0_26] : memref<256x1xf32, #tpu.memory_space<vmem>>, vector<256x1xf32>
      %51 = vector.shape_cast %50 : vector<256x1xf32> to vector<1x256x1xf32>
      %cst_27 = arith.constant dense<0.000000e+00> : vector<1xf32>
      %52 = vector.multi_reduction <add>, %51, %cst_27 [1, 2] : vector<1x256x1xf32> to vector<1xf32>
      %53 = vector.shape_cast %52 : vector<1xf32> to vector<1x1x1xf32>
      %54 = vector.extract %53[0, 0, 0] : f32 from vector<1x1x1xf32>
      %55 = vector.broadcast %54 : f32 to vector<1x1xf32>
      %56 = vector.shape_cast %55 : vector<1x1xf32> to vector<1x1x1xf32>
      %57 = vector.broadcast %56 : vector<1x1x1xf32> to vector<1x8x128xf32>
      %c0_28 = arith.constant 0 : index
      %c0_29 = arith.constant 0 : index
      %c0_30 = arith.constant 0 : index
      %58 = vector.load %arg5[%c0_28, %c0_29, %c0_30] : memref<1x8x128xf32, #tpu.memory_space<vmem>>, vector<1x8x128xf32>
      tpu.vector_store %arg5[%c0_28, %c0_29, %c0_30], %57 {strides = array<i32>} : memref<1x8x128xf32, #tpu.memory_space<vmem>>, vector<1x8x128xf32>,
    } else {
    }
    return
  }
  func.func @transform_0(%arg0: i32, %arg1: i32) -> (i32, i32) {
    %c1_i32 = arith.constant 1 : i32
    %0 = arith.muli %arg0, %c1_i32 : i32
    %1 = arith.addi %0, %arg1 : i32
    %c0_i32 = arith.constant 0 : i32
    %c0_i32_0 = arith.constant 0 : i32
    return %1, %c0_i32 : i32, i32
  }
  func.func @transform_1(%arg0: i32, %arg1: i32) -> (i32, i32) {
    %c1_i32 = arith.constant 1 : i32
    %0 = arith.muli %arg0, %c1_i32 : i32
    %1 = arith.addi %0, %arg1 : i32
    %c0_i32 = arith.constant 0 : i32
    %c0_i32_0 = arith.constant 0 : i32
    return %1, %c0_i32 : i32, i32
  }
  func.func @transform_2(%arg0: i32, %arg1: i32) -> (i32, i32, i32) {
    %c0_i32 = arith.constant 0 : i32
    %c0_i32_0 = arith.constant 0 : i32
    %c0_i32_1 = arith.constant 0 : i32
    return %arg0, %c0_i32, %c0_i32_0 : i32, i32, i32
  }
  func.func @transform_3(%arg0: i32, %arg1: i32) -> (i32, i32, i32) {
    %c0_i32 = arith.constant 0 : i32
    %c0_i32_0 = arith.constant 0 : i32
    %c0_i32_1 = arith.constant 0 : i32
    return %arg0, %c0_i32, %c0_i32_0 : i32, i32, i32
  }
}

</mosaic_0001>

<bundles_post_ra>
// kernel: tpu_custom_call.1
= control target key start
LH: loop header
LB: loop body
LE: loop exit
PB: predicated region body
PF: predicated region fallthrough
CT: control target
= control target key end

     0   :  { %9 = vsyncpa [#allocation5], 0  ;;  %s3462_s0 = inlined_call_operand.vmem [shape: f32[512,128], index: 0, kind: input, shape index: {}]   ;;  %s3463_s1 = inlined_call_operand.vmem [shape: s32[512,1], index: 1, kind: input, shape index: {}]   ;;  %s3464_s2 = inlined_call_operand.hbm [shape: f32[2,8,128], index: 2, kind: output, shape index: {0}]   ;;  %s3465_s3 = inlined_call_operand.hbm [shape: f32[2,8,128], index: 3, kind: output, shape index: {1}]  }
   0x1   :  { %11 = vsyncpa [#allocation5 + $0x1], 0 }
   0x2   :  { %12 = vsyncpa [#allocation7], 0 }
   0x3   :  { %14 = vsyncpa [#allocation7 + $0x1], 0  ;;  %s2085_s12 = smov 0   ;;  %s2087_s13 = smov 0  }
   0x4   :  { %s2089_s14 = smov 0   ;;  %s2091_s15 = smov 0  }
   0x5   :  { %s2093_s16 = smov 0   ;;  %s2095_s17 = smov 0  }
   0x6 LB: > { %s1684_s18 = sadd.s32 4294967295, %s2059_s17   ;;  %s1685_s19 = sadd.s32 4294967294, %s2059_s17   ;;  %s2059_s17 = sphi %s2095_s17, %s20_s17   ;;  %s2055_s16 = sphi %s2093_s16, %s3846_s16   ;;  %s2051_s15 = sphi %s2091_s15, %s3845_s15   ;;  %s2047_s14 = sphi %s2089_s14, %s3844_s14   ;;  %s2043_s13 = sphi %s2087_s13, %s3843_s13   ;;  %s2039_s12 = sphi %s2085_s12, %s3842_s12  }
   0x7   : > { %s32_s20 = sadd.s32 1, %s2055_s16  ;;  %s95_s21 = sadd.s32 1, %s2047_s14 }
   0x8   : > { %p34_p0 = scmp.ge.s32.totalorder %s32_s20, 2  ;;  %p105_p1 = scmp.ne.s32.totalorder %s2047_s14, %s2043_s13 }
   0x9   : > { %p106_p2 = scmp.eq.s32.totalorder %s1684_s18, 1  ;;  %p111_p3 = scmp.ne.s32.totalorder %s2043_s13, %s2039_s12 }
   0xa   : > { %s3848_s20 = smov (%p34_p0, %s32_s20), 0  ;;  %p112_p5 = scmp.eq.s32.totalorder %s1685_s19, 1 }
   0xb   : > { %p2125_p4 = por %p106_p2, %p105_p1  ;;  %s92_s23 = ssub.s32 %s2055_s16, %s3848_s20 }
   0xc   : > { %p1688_p6 = scmp.ge.s32.totalorder %s2059_s17, 1  ;;  %p93_p7 = scmp.eq.s32.totalorder %s92_s23, 0 }
   0xd   : > { %p2132_p8 = por %p112_p5, %p111_p3  ;;  %p178_p9 = scmp.lt.s32.totalorder %s2059_s17, 3 }
   0xe   : > { %s2138_s25 = scalar_select %p93_p7, %s2047_s14, %s95_s21  }
   0xf   : > { %p179_p10 = pnand %p1688_p6, %p178_p9 }
  0x11   : > { %182 = sbr.rel (%p179_p10) target bundleno = 854 (0x356), region = 28 }
  0x16   : > { %s1691_s26 = sshll.u32 %s2051_s15, 5  ;;  %v2061_v26 = vmov 0   ;;  %vm3509_vm3 = vcmask 7168   ;;  %s3380_s7 = sand.u32 1, %s2043_s13  }
  0x17   : > { %p216_p11 = scmp.lt.s32.totalorder %s1691_s26, 63  ;;  %1799 = vset.pattern.permute.xlu1 %v2061_v26  ;;  %1800 = vset.pattern.permute.xlu0 %v2061_v26  ;;  %s1689_s8 = sshll.u32 %s3380_s7, 3 }
  0x18   : > { %s213_s9 = scalar_lea.vmem [#allocation6], %s1689_s8  ;;  %s206_s11 = scalar_lea.vmem [#allocation4], %s1689_s8 }
  0x19   : > { %s3850_s26 = smov (!%p216_p11, %s1691_s26), 63  ;;  %s1573_s10 = sshll.u32 %s213_s9, 4  ;;  %s3384_s10 = int_to_ptr.vmem [resolvable:$true] %s1573_s10 }
  0x1a   : > { %s1692_s27 = sshll.u32 %s3850_s26, 3  ;;  %s1560_s18 = sshll.u32 %s206_s11, 4  ;;  %s3391_s18 = int_to_ptr.vmem [resolvable:$true] %s1560_s18 }
  0x1b   : > { %s2149_s30 = scalar_lea.vmem %s3462_s0, %s1692_s27  ;;  %s2306_s6 = scalar_lea.vmem %s3463_s1, %s1692_s27 }
  0x1c   : > { %v2152_v0 = vld [vmem:[%s2149_s30 + $0x10] sm:$0xff]  ;;  %v2155_v1 = vld [vmem:[%s2149_s30] sm:$0xff]  ;;  %v2160_v2 = vld [vmem:[%s2149_s30 + $0x18] sm:$0xff]  ;;  %s1729_s19 = sshll.u32 %s2051_s15, 7  ;;  %s1542_s15 = scalar_lea.sflag [#allocation5], %s3380_s7 }
  0x1d   : > { %689 = vmax.xlane.f32.xlu1 %v2152_v0  ;;  %685 = vmax.xlane.f32.xlu0 %v2155_v1  ;;  %v2163_v3 = vld [vmem:[%s2149_s30 + $0x8] sm:$0xff]  ;;  %v2168_v4 = vld [vmem:[%s2149_s30 + $0x20] sm:$0xff]  ;;  %v2176_v6 = vld [vmem:[%s2149_s30 + $0x30] sm:$0xff]  ;;  %s3389_s26 = scalar_lea.hbm %s3464_s2, %s1729_s19  ;;  %s3396_s4 = scalar_lea.hbm %s3465_s3, %s1729_s19 }
  0x1e   : > { %v2171_v5 = vld [vmem:[%s2149_s30 + $0x28] sm:$0xff]  ;;  %v2179_v7 = vld [vmem:[%s2149_s30 + $0x38] sm:$0xff]  ;;  %v2184_v8 = vld [vmem:[%s2149_s30 + $0x40] sm:$0xff]  ;;  %s1953_s5 = scalar_lea.vmem %s3391_s18, 128 }
  0x1f   : > { %v2187_v9 = vld [vmem:[%s2149_s30 + $0x48] sm:$0xff]  ;;  %v2192_v10 = vld [vmem:[%s2149_s30 + $0x50] sm:$0xff]  ;;  %v2195_v11 = vld [vmem:[%s2149_s30 + $0x58] sm:$0xff]  ;;  %p1954_p12 = scmp.ne.s32.totalorder %s3391_s18, %s1953_s5 }
  0x20   : > { %v2200_v12 = vld [vmem:[%s2149_s30 + $0x60] sm:$0xff]  ;;  %v2203_v13 = vld [vmem:[%s2149_s30 + $0x68] sm:$0xff]  ;;  %v2208_v14 = vld [vmem:[%s2149_s30 + $0x70] sm:$0xff] }
  0x21   : > { %691 = vmax.xlane.f32.xlu1 %v2160_v2  ;;  %687 = vmax.xlane.f32.xlu0 %v2163_v3  ;;  %v2211_v15 = vld [vmem:[%s2149_s30 + $0x78] sm:$0xff]  ;;  %v2216_v16 = vld [vmem:[%s2149_s30 + $0x80] sm:$0xff]  ;;  %v2219_v17 = vld [vmem:[%s2149_s30 + $0x88] sm:$0xff]  ;;  %p1955_p13 = pnand %p1954_p12, %p2125_p4 }
  0x22   : > { %v2224_v18 = vld [vmem:[%s2149_s30 + $0x90] sm:$0xff]  ;;  %v2227_v19 = vld [vmem:[%s2149_s30 + $0x98] sm:$0xff]  ;;  %v2232_v20 = vld [vmem:[%s2149_s30 + $0xa0] sm:$0xff] }
  0x23   : > { %v2235_v21 = vld [vmem:[%s2149_s30 + $0xa8] sm:$0xff]  ;;  %v2240_v22 = vld [vmem:[%s2149_s30 + $0xb8] sm:$0xff]  ;;  %v2243_v23 = vld [vmem:[%s2149_s30 + $0xb0] sm:$0xff]  ;;  %p1956_p0 = pneg %p1955_p13 }
  0x24   : > { %v2248_v24 = vld [vmem:[%s2149_s30 + $0xc8] sm:$0xff]  ;;  %v2251_v25 = vld [vmem:[%s2149_s30 + $0xc0] sm:$0xff]  ;;  %v2256_v27 = vld [vmem:[%s2149_s30 + $0xd8] sm:$0xff] }
  0x25   : > { %693 = vmax.xlane.f32.xlu0 %v2168_v4  ;;  %695 = vmax.xlane.f32.xlu1 %v2171_v5  ;;  %3544 = vst [vmem:[#allocation10_spill] sm:$0xff] %v2248_v24  ;;  %3545 = vst [vmem:[#allocation11_spill] sm:$0xff] %v2256_v27  ;;  %v2259_v28 = vld [vmem:[%s2149_s30 + $0xd0] sm:$0xff]  ;;  %v2264_v29 = vld [vmem:[%s2149_s30 + $0xe8] sm:$0xff] }
  0x26   : > { %3546 = vst [vmem:[#allocation12_spill] sm:$0xff] %v2259_v28  ;;  %3547 = vst [vmem:[#allocation13_spill] sm:$0xff] %v2264_v29  ;;  %v2267_v30 = vld [vmem:[%s2149_s30 + $0xe0] sm:$0xff]  ;;  %v330_v31 = vld [vmem:[%s2149_s30 + $0xf8] sm:$0xff] }
  0x27   : > { %3548 = vst [vmem:[#allocation14_spill] sm:$0xff] %v2267_v30  ;;  %v329_v32 = vld [vmem:[%s2149_s30 + $0xf0] sm:$0xff]  ;;  %v2309_v61 = vld [vmem:[%s2306_s6 + $0x8] sm:$0xff]  ;;  %v2312_v62 = vld [vmem:[%s2306_s6] sm:$0xff] }
  0x28   : > { %v2317_v63 = vld [vmem:[%s2306_s6 + $0x18] sm:$0xff]  ;;  %v2320_v26 = vld [vmem:[%s2306_s6 + $0x10] sm:$0xff]  ;;  %vm363_vm6 = vcmp.ge.s32.totalorder %v2312_v62, 0  ;;  %vm395_vm7 = vcmp.lt.s32.totalorder %v2312_v62, 128  ;;  %vm364_vm12 = vcmp.ge.s32.totalorder %v2309_v61, 0  ;;  %vm396_vm13 = vcmp.lt.s32.totalorder %v2309_v61, 128 }
  0x29   : > { %697 = vmax.xlane.f32.xlu0 %v2176_v6  ;;  %699 = vmax.xlane.f32.xlu1 %v2179_v7  ;;  %vm2646_vm9 = vmand %vm363_vm6, %vm395_vm7 }
  0x2a   : > { %vm2673_vm15 = vmand %vm364_vm12, %vm396_vm13 }
  0x2d   : > { %701 = vmax.xlane.f32.xlu0 %v2184_v8  ;;  %703 = vmax.xlane.f32.xlu1 %v2187_v9 }
  0x31   : > { %705 = vmax.xlane.f32.xlu0 %v2192_v10  ;;  %707 = vmax.xlane.f32.xlu1 %v2195_v11 }
  0x35   : > { %709 = vmax.xlane.f32.xlu0 %v2200_v12  ;;  %711 = vmax.xlane.f32.xlu1 %v2203_v13 }
  0x39   : > { %713 = vmax.xlane.f32.xlu0 %v2208_v14  ;;  %715 = vmax.xlane.f32.xlu1 %v2211_v15 }
  0x3d   : > { %717 = vmax.xlane.f32.xlu0 %v2216_v16  ;;  %719 = vmax.xlane.f32.xlu1 %v2219_v17 }
  0x41   : > { %721 = vmax.xlane.f32.xlu0 %v2224_v18  ;;  %723 = vmax.xlane.f32.xlu1 %v2227_v19 }
  0x45   : > { %725 = vmax.xlane.f32.xlu0 %v2232_v20  ;;  %727 = vmax.xlane.f32.xlu1 %v2235_v21 }
  0x49   : > { %731 = vmax.xlane.f32.xlu0 %v2240_v22  ;;  %729 = vmax.xlane.f32.xlu1 %v2243_v23 }
  0x4d   : > { %735 = vmax.xlane.f32.xlu0 %v2248_v24  ;;  %733 = vmax.xlane.f32.xlu1 %v2251_v25 }
  0x51   : > { %739 = vmax.xlane.f32.xlu0 %v2256_v27  ;;  %737 = vmax.xlane.f32.xlu1 %v2259_v28 }
  0x55   : > { %743 = vmax.xlane.f32.xlu0 %v2264_v29  ;;  %741 = vmax.xlane.f32.xlu1 %v2267_v30  ;;  %v361_v29 = vld [vmem:[%s2306_s6 + $0xf0] sm:$0xff] }
  0x59   : > { %747 = vmax.xlane.f32.xlu0 %v330_v31  ;;  %745 = vmax.xlane.f32.xlu1 %v329_v32  ;;  %v2325_v31 = vld [vmem:[%s2306_s6 + $0x28] sm:$0xff]  ;;  %v2328_v32 = vld [vmem:[%s2306_s6 + $0x20] sm:$0xff] }
  0xa6   : > { %v2273_v33 = vpop.xlane.xlu1 %689  ;;  %v2275_v34 = vpop.xlane.xlu0 %685 }
  0xa7   : > { %3549 = vst [vmem:[#allocation15_spill] sm:$0xff] %v2273_v33  ;;  %3550 = vst [vmem:[#allocation16_spill] sm:$0xff] %v2275_v34  ;;  %v749_v35 = vsub.f32 %v2155_v1, %v2275_v34  ;;  %v751_v41 = vsub.f32 %v2152_v0, %v2273_v33  ;;  %v353_v33 = vld [vmem:[%s2306_s6 + $0xb0] sm:$0xff]  ;;  %v355_v34 = vld [vmem:[%s2306_s6 + $0xc0] sm:$0xff] }
  0xa9   : > { %v781_v36 = vmul.f32 1.442695, %v749_v35  ;;  %v785_v46 = vmul.f32 1.442695, %v751_v41  ;;  %v2333_v35 = vld [vmem:[%s2306_s6 + $0x38] sm:$0xff] }
  0xaa   : > { %v2279_v37 = vpop.xlane.xlu1 %691  ;;  %v2281_v38 = vpop.xlane.xlu0 %687  ;;  %v2349_v41 = vld [vmem:[%s2306_s6 + $0x58] sm:$0xff] }
  0xab   : > { %3551 = vst [vmem:[#allocation17_spill] sm:$0xff] %v2279_v37  ;;  %3552 = vst [vmem:[#allocation18_spill] sm:$0xff] %v2281_v38  ;;  %v752_v39 = vsub.f32 %v2160_v2, %v2279_v37  ;;  %v750_v40 = vsub.f32 %v2163_v3, %v2281_v38  ;;  %1801 = vpow2.f32 %v781_v36  ;;  %v2336_v36 = vld [vmem:[%s2306_s6 + $0x30] sm:$0xff] }
  0xac   : > { %3556 = vst [vmem:[#allocation22_spill] sm:$0xff] %v2349_v41  ;;  %vm369_vm13 = vcmp.ge.s32.totalorder %v2336_v36, 0 }
  0xad   : > { %v787_v42 = vmul.f32 1.442695, %v752_v39  ;;  %v783_v43 = vmul.f32 1.442695, %v750_v40  ;;  %v2341_v39 = vld [vmem:[%s2306_s6 + $0x48] sm:$0xff]  ;;  %v2344_v40 = vld [vmem:[%s2306_s6 + $0x40] sm:$0xff] }
  0xae   : > { %v2289_v44 = vpop.xlane.xlu0 %693  ;;  %v2291_v45 = vpop.xlane.xlu1 %695 }
  0xaf   : > { %3553 = vst [vmem:[#allocation19_spill] sm:$0xff] %v2289_v44  ;;  %1803 = vpow2.f32 %v787_v42  ;;  %3554 = vst [vmem:[#allocation20_spill] sm:$0xff] %v2291_v45  ;;  %v753_v47 = vsub.f32 %v2168_v4, %v2289_v44  ;;  %v754_v49 = vsub.f32 %v2171_v5, %v2291_v45  ;;  %v2352_v42 = vld [vmem:[%s2306_s6 + $0x50] sm:$0xff] }
  0xb0   : > { %1805 = vpow2.f32 %v783_v43  ;;  %v2357_v43 = vld [vmem:[%s2306_s6 + $0x60] sm:$0xff] }
  0xb1   : > { %1807 = vpow2.f32 %v785_v46  ;;  %v789_v51 = vmul.f32 1.442695, %v753_v47  ;;  %v791_v53 = vmul.f32 1.442695, %v754_v49  ;;  %3557 = vst [vmem:[#allocation23_spill] sm:$0xff] %v2357_v43  ;;  %v2360_v46 = vld [vmem:[%s2306_s6 + $0x78] sm:$0xff] }
  0xb2   : > { %v2295_v48 = vpop.xlane.xlu0 %697  ;;  %3558 = vst [vmem:[#allocation24_spill] sm:$0xff] %v2360_v46  ;;  %v2365_v47 = vld [vmem:[%s2306_s6 + $0x68] sm:$0xff] }
  0xb3   : > { %3555 = vst [vmem:[#allocation21_spill] sm:$0xff] %v2295_v48  ;;  %v755_v50 = vsub.f32 %v2176_v6, %v2295_v48  ;;  %3559 = vst [vmem:[#allocation25_spill] sm:$0xff] %v2365_v47  ;;  %v352_v49 = vld [vmem:[%s2306_s6 + $0xa8] sm:$0xff]  ;;  %v2406_v48 = vld [vmem:[%s2306_s6 + $0xa0] sm:$0xff] }
  0xb4   : > { %3570 = vst [vmem:[#allocation36_spill] sm:$0xff] %v2406_v48 }
  0xb5   : > { %v793_v52 = vmul.f32 1.442695, %v755_v50  ;;  %v2370_v50 = vld [vmem:[%s2306_s6 + $0x70] sm:$0xff] }
  0xb6   : > { %3560 = vst [vmem:[#allocation26_spill] sm:$0xff] %v2370_v50 }
  0xb7   : > { %1809 = vpow2.f32 %v793_v52  ;;  %v2373_v52 = vpop.xlane.xlu1 %699 }
  0xb8   : > { %1811 = vpow2.f32 %v789_v51  ;;  %v1802_v54 = vpop.eup %1801  ;;  %v354_v51 = vld [vmem:[%s2306_s6 + $0xb8] sm:$0xff]  ;;  %3561 = vst [vmem:[#allocation27_spill] sm:$0xff] %v2373_v52 }
  0xb9   : > { %1813 = vpow2.f32 %v791_v53  ;;  %845 = vadd.xlane.f32.xlu0 %v1802_v54  ;;  %v2377_v53 = vld [vmem:[%s2306_s6 + $0x80] sm:$0xff]  ;;  %v356_v54 = vld [vmem:[%s2306_s6 + $0xc8] sm:$0xff] }
  0xba   : > { %3562 = vst [vmem:[#allocation28_spill] sm:$0xff] %v2377_v53 }
  0xbc   : > { %v1804_v55 = vpop.eup %1803 }
  0xbd   : > { %v1806_v56 = vpop.eup %1805  ;;  %851 = vadd.xlane.f32.xlu0 %v1804_v55  ;;  %v2381_v55 = vpop.xlane.xlu1 %703 }
  0xbe   : > { %847 = vadd.xlane.f32.xlu1 %v1806_v56  ;;  %v1808_v57 = vpop.eup %1807  ;;  %3563 = vst [vmem:[#allocation29_spill] sm:$0xff] %v2381_v55  ;;  %v2384_v56 = vld [vmem:[%s2306_s6 + $0x88] sm:$0xff] }
  0xbf   : > { %3564 = vst [vmem:[#allocation30_spill] sm:$0xff] %v2384_v56 }
  0xc2   : > { %849 = vadd.xlane.f32.xlu1 %v1808_v57  ;;  %v359_v57 = vld [vmem:[%s2306_s6 + $0xe0] sm:$0xff] }
  0xc4   : > { %v1810_v58 = vpop.eup %1809 }
  0xc5   : > { %v1812_v59 = vpop.eup %1811  ;;  %857 = vadd.xlane.f32.xlu0 %v1810_v58  ;;  %v2387_v58 = vpop.xlane.xlu0 %701 }
  0xc6   : > { %853 = vadd.xlane.f32.xlu1 %v1812_v59  ;;  %v1814_v60 = vpop.eup %1813  ;;  %3565 = vst [vmem:[#allocation31_spill] sm:$0xff] %v2387_v58  ;;  %v2391_v59 = vld [vmem:[%s2306_s6 + $0x90] sm:$0xff]  ;;  %v757_v45 = vsub.f32 %v2184_v8, %v2387_v58  ;;  %v358_v58 = vld [vmem:[%s2306_s6 + $0xd8] sm:$0xff] }
  0xc7   : > { %3566 = vst [vmem:[#allocation32_spill] sm:$0xff] %v2391_v59 }
  0xc8   : > { %v797_v44 = vmul.f32 1.442695, %v757_v45  ;;  %v360_v45 = vld [vmem:[%s2306_s6 + $0xe8] sm:$0xff] }
  0xca   : > { %855 = vadd.xlane.f32.xlu1 %v1814_v60  ;;  %v362_v60 = vld [vmem:[%s2306_s6 + $0xf8] sm:$0xff]  ;;  %1815 = vpow2.f32 %v797_v44 }
  0xdb   : > { %465 = vperm.xlu1 %1799, %v2309_v61   ;;  %462 = vperm.xlu0 %1800, %v2312_v62  }
  0xdf   : > { %471 = vperm.xlu1 %1799, %v2317_v63   ;;  %468 = vperm.xlu0 %1800, %v2320_v26  }
  0xe3   : > { %477 = vperm.xlu1 %1799, %v2325_v31   ;;  %474 = vperm.xlu0 %1800, %v2328_v32  }
  0xe7   : > { %483 = vperm.xlu1 %1799, %v2333_v35   ;;  %480 = vperm.xlu0 %1800, %v2336_v36  }
  0xeb   : > { %489 = vperm.xlu1 %1799, %v2341_v39   ;;  %486 = vperm.xlu0 %1800, %v2344_v40  }
  0xef   : > { %495 = vperm.xlu1 %1799, %v2349_v41   ;;  %492 = vperm.xlu0 %1800, %v2352_v42  }
  0xf3   : > { %498 = vperm.xlu1 %1799, %v2357_v43   ;;  %507 = vperm.xlu0 %1800, %v2360_v46   ;;  %v1816_v46 = vpop.eup %1815 }
  0xf7   : > { %501 = vperm.xlu1 %1799, %v2365_v47   ;;  %525 = vperm.xlu0 %1800, %v352_v49   ;;  %v2394_v49 = vpop.xlane.xlu1 %707 }
  0xf8   : > { %3567 = vst [vmem:[#allocation33_spill] sm:$0xff] %v2394_v49 }
  0xfb   : > { %504 = vperm.xlu1 %1799, %v2370_v50   ;;  %531 = vperm.xlu0 %1800, %v354_v51   ;;  %v2396_v51 = vpop.xlane.xlu0 %705  ;;  %v2403_v37 = vpop.xlane.xlu1 %711 }
  0xfc   : > { %3568 = vst [vmem:[#allocation34_spill] sm:$0xff] %v2396_v51 }
  0xff   : > { %510 = vperm.xlu1 %1799, %v2377_v53   ;;  %537 = vperm.xlu0 %1800, %v356_v54   ;;  %v2400_v54 = vld [vmem:[%s2306_s6 + $0x98] sm:$0xff] }
 0x100   : > { %3569 = vst [vmem:[#allocation35_spill] sm:$0xff] %v2400_v54 }
 0x103   : > { %513 = vperm.xlu1 %1799, %v2384_v56   ;;  %546 = vperm.xlu0 %1800, %v359_v57   ;;  %v2408_v57 = vpop.xlane.xlu0 %709 }
 0x107   : > { %516 = vperm.xlu1 %1799, %v2391_v59   ;;  %555 = vperm.xlu0 %1800, %v362_v60   ;;  %v2414_v60 = vpop.xlane.xlu1 %715  ;;  %v2416_v38 = vpop.xlane.xlu0 %713  ;;  %v357_v59 = vld [vmem:[%s2306_s6 + $0xd0] sm:$0xff] }
 0x10b   : > { %519 = vperm.xlu1 %1799, %v2400_v54   ;;  %v2419_v54 = vpop.xlane.xlu1 %719  ;;  %v2422_v56 = vpop.xlane.xlu0 %717 }
 0x10f   : > { %522 = vperm.xlu1 %1799, %v2406_v48   ;;  %v2425_v48 = vpop.xlane.xlu1 %723  ;;  %v2427_v53 = vpop.xlane.xlu0 %721 }
 0x113   : > { %528 = vperm.xlu1 %1799, %v353_v33   ;;  %v2430_v33 = vpop.xlane.xlu1 %727  ;;  %v2433_v44 = vpop.xlane.xlu0 %725 }
 0x117   : > { %534 = vperm.xlu1 %1799, %v355_v34   ;;  %v2435_v34 = vpop.xlane.xlu1 %729  ;;  %v2437_v50 = vpop.xlane.xlu0 %731 }
 0x11b   : > { %540 = vperm.xlu1 %1799, %v357_v59   ;;  %v2439_v59 = vpop.xlane.xlu1 %733  ;;  %v2441_v30 = vpop.xlane.xlu0 %735 }
 0x11c   : > { %3571 = vst [vmem:[#allocation37_spill] sm:$0xff] %v2439_v59 }
 0x11f   : > { %543 = vperm.xlu1 %1799, %v358_v58   ;;  %v756_v58 = vsub.f32 %v2179_v7, %v2373_v52  ;;  %v2445_v47 = vpop.xlane.xlu1 %737 }
 0x120   : > { %3572 = vst [vmem:[#allocation38_spill] sm:$0xff] %v2445_v47 }
 0x121   : > { %v795_v27 = vmul.f32 1.442695, %v756_v58  ;;  %v759_v58 = vsub.f32 %v2192_v10, %v2396_v51 }
 0x123   : > { %549 = vperm.xlu1 %1799, %v360_v45   ;;  %v2447_v45 = vpop.xlane.xlu0 %739  ;;  %1817 = vpow2.f32 %v795_v27  ;;  %v801_v27 = vmul.f32 1.442695, %v759_v58 }
 0x124   : > { %3573 = vst [vmem:[#allocation39_spill] sm:$0xff] %v2447_v45 }
 0x126   : > { %861 = vadd.xlane.f32.xlu0 %v1816_v46  ;;  %v758_v46 = vsub.f32 %v2187_v9, %v2381_v55 }
 0x127   : > { %552 = vperm.xlu1 %1799, %v361_v29   ;;  %v2451_v29 = vpop.xlane.xlu1 %741  ;;  %v2453_v43 = vpop.xlane.xlu0 %743 }
 0x128   : > { %3574 = vst [vmem:[#allocation40_spill] sm:$0xff] %v2451_v29  ;;  %3575 = vst [vmem:[#allocation41_spill] sm:$0xff] %v2453_v43  ;;  %v799_v28 = vmul.f32 1.442695, %v758_v46  ;;  %v459_v46 = vlaneseq }
 0x12a   : > { %1819 = vpow2.f32 %v799_v28  ;;  %v2477_v51 = vand.u32 127, %v459_v46 }
 0x12b   : > { %v2455_v41 = vpop.xlane.xlu1 %745  ;;  %v2457_v24 = vpop.xlane.xlu0 %747  ;;  %1821 = vpow2.f32 %v801_v27 }
 0x12c   : > { %3576 = vst [vmem:[#allocation42_spill] sm:$0xff] %v2455_v41  ;;  %3577 = vst [vmem:[#allocation43_spill] sm:$0xff] %v2457_v24 }
 0x130   : > { %v1818_v45 = vpop.eup %1817 }
 0x137   : > { %v1820_v29 = vpop.eup %1819 }
 0x142   : > { %v2461_v47 = vpop.xlane.xlu0 %845 }
 0x143   : > { %3579 = vst [vmem:[#allocation45_spill] sm:$0xff] %v2461_v47 }
 0x146   : > { %v2467_v43 = vpop.xlane.xlu0 %851 }
 0x147   : > { %v2459_v52 = vpop.xlane.xlu1 %847  ;;  %3581 = vst [vmem:[#allocation47_spill] sm:$0xff] %v2467_v43 }
 0x148   : > { %3578 = vst [vmem:[#allocation44_spill] sm:$0xff] %v2459_v52  ;;  %v760_v52 = vsub.f32 %v2195_v11, %v2394_v49  ;;  %v761_v49 = vsub.f32 %v2200_v12, %v2408_v57 }
 0x14a   : > { %v2491_v43 = vmul.f32 1.442695, %v761_v49 }
 0x14b   : > { %v2465_v55 = vpop.xlane.xlu1 %849  ;;  %859 = vadd.xlane.f32.xlu1 %v1818_v45  ;;  %v803_v45 = vmul.f32 1.442695, %v760_v52  ;;  %v762_v52 = vsub.f32 %v2203_v13, %v2403_v37 }
 0x14c   : > { %3580 = vst [vmem:[#allocation46_spill] sm:$0xff] %v2465_v55 }
 0x14d   : > { %1823 = vpow2.f32 %v803_v45  ;;  %v3526_v45 = vmov 0.0   ;;  %v807_v49 = vmul.f32 1.442695, %v762_v52  ;;  %v764_v52 = vsub.f32 %v2211_v15, %v2414_v60 }
 0x14e   : > { %v2471_v24 = vpop.xlane.xlu0 %857  ;;  %235 = vst.msk [vmem:[#allocation2] sm:$0xff] %vm3509_vm3, %v3526_v45  ;;  %267 = vst.msk [vmem:[#allocation3] sm:$0xff] %vm3509_vm3, %v3526_v45  ;;  %1825 = vpow2.f32 %v2491_v43 }
 0x14f   : > { %863 = vadd.xlane.f32.xlu1 %v1820_v29  ;;  %v2469_v28 = vpop.xlane.xlu1 %853  ;;  %236 = vst.msk [vmem:[#allocation2 + $0x8] sm:$0xff] %vm3509_vm3, %v3526_v45  ;;  %237 = vst.msk [vmem:[#allocation2 + $0x10] sm:$0xff] %vm3509_vm3, %v3526_v45  ;;  %1827 = vpow2.f32 %v807_v49 }
 0x150   : > { %238 = vst.msk [vmem:[#allocation2 + $0x18] sm:$0xff] %vm3509_vm3, %v3526_v45  ;;  %239 = vst.msk [vmem:[#allocation2 + $0x20] sm:$0xff] %vm3509_vm3, %v3526_v45 }
 0x151   : > { %240 = vst.msk [vmem:[#allocation2 + $0x28] sm:$0xff] %vm3509_vm3, %v3526_v45  ;;  %241 = vst.msk [vmem:[#allocation2 + $0x30] sm:$0xff] %vm3509_vm3, %v3526_v45 }
 0x152   : > { %242 = vst.msk [vmem:[#allocation2 + $0x38] sm:$0xff] %vm3509_vm3, %v3526_v45  ;;  %243 = vst.msk [vmem:[#allocation2 + $0x40] sm:$0xff] %vm3509_vm3, %v3526_v45 }
 0x153   : > { %v2475_v47 = vpop.xlane.xlu1 %855  ;;  %244 = vst.msk [vmem:[#allocation2 + $0x48] sm:$0xff] %vm3509_vm3, %v3526_v45  ;;  %245 = vst.msk [vmem:[#allocation2 + $0x50] sm:$0xff] %vm3509_vm3, %v3526_v45 }
 0x154   : > { %246 = vst.msk [vmem:[#allocation2 + $0x58] sm:$0xff] %vm3509_vm3, %v3526_v45  ;;  %247 = vst.msk [vmem:[#allocation2 + $0x60] sm:$0xff] %vm3509_vm3, %v3526_v45 }
 0x155   : > { %248 = vst.msk [vmem:[#allocation2 + $0x68] sm:$0xff] %vm3509_vm3, %v3526_v45  ;;  %249 = vst.msk [vmem:[#allocation2 + $0x70] sm:$0xff] %vm3509_vm3, %v3526_v45 }
 0x156   : > { %v463_v55 = vpop.permute.xlu0 %462  ;;  %250 = vst.msk [vmem:[#allocation2 + $0x78] sm:$0xff] %vm3509_vm3, %v3526_v45  ;;  %251 = vst.msk [vmem:[#allocation2 + $0x80] sm:$0xff] %vm3509_vm3, %v3526_v45 }
 0x157   : > { %v466_v41 = vpop.permute.xlu1 %465  ;;  %vm557_vm0 = vcmp.eq.s32.totalorder %v2477_v51, %v463_v55  ;;  %252 = vst.msk [vmem:[#allocation2 + $0x88] sm:$0xff] %vm3509_vm3, %v3526_v45  ;;  %253 = vst.msk [vmem:[#allocation2 + $0x90] sm:$0xff] %vm3509_vm3, %v3526_v45 }
 0x158   : > { %v589_v29 = vsel %vm557_vm0, %v2155_v1, 0.0  ;;  %vm558_vm1 = vcmp.eq.s32.totalorder %v2477_v51, %v466_v41  ;;  %v2496_v41 = vpop.eup %1821  ;;  %254 = vst.msk [vmem:[#allocation2 + $0x98] sm:$0xff] %vm3509_vm3, %v3526_v45  ;;  %255 = vst.msk [vmem:[#allocation2 + $0xa0] sm:$0xff] %vm3509_vm3, %v3526_v45 }
 0x159   : > { %621 = vadd.xlane.f32.xlu1 %v589_v29  ;;  %v590_v27 = vsel %vm558_vm1, %v2163_v3, 0.0  ;;  %256 = vst.msk [vmem:[#allocation2 + $0xa8] sm:$0xff] %vm3509_vm3, %v3526_v45  ;;  %257 = vst.msk [vmem:[#allocation2 + $0xb0] sm:$0xff] %vm3509_vm3, %v3526_v45  ;;  %v763_v29 = vsub.f32 %v2208_v14, %v2416_v38  ;;  %vm367_vm1 = vcmp.ge.s32.totalorder %v2328_v32, 0 }
 0x15a   : > { %v2482_v58 = vpop.permute.xlu0 %468  ;;  %258 = vst.msk [vmem:[#allocation2 + $0xb8] sm:$0xff] %vm3509_vm3, %v3526_v45  ;;  %259 = vst.msk [vmem:[#allocation2 + $0xc0] sm:$0xff] %vm3509_vm3, %v3526_v45 }
 0x15b   : > { %v2487_v46 = vpop.permute.xlu1 %471  ;;  %260 = vst.msk [vmem:[#allocation2 + $0xc8] sm:$0xff] %vm3509_vm3, %v3526_v45  ;;  %261 = vst.msk [vmem:[#allocation2 + $0xd0] sm:$0xff] %vm3509_vm3, %v3526_v45  ;;  %vm559_vm4 = vcmp.eq.s32.totalorder %v2477_v51, %v2482_v58  ;;  %v809_v43 = vmul.f32 1.442695, %v763_v29  ;;  %v811_v29 = vmul.f32 1.442695, %v764_v52 }
 0x15c   : > { %262 = vst.msk [vmem:[#allocation2 + $0xd8] sm:$0xff] %vm3509_vm3, %v3526_v45  ;;  %263 = vst.msk [vmem:[#allocation2 + $0xe0] sm:$0xff] %vm3509_vm3, %v3526_v45  ;;  %vm560_vm10 = vcmp.eq.s32.totalorder %v2477_v51, %v2487_v46 }
 0x15d   : > { %623 = vadd.xlane.f32.xlu1 %v590_v27  ;;  %264 = vst.msk [vmem:[#allocation2 + $0xe8] sm:$0xff] %vm3509_vm3, %v3526_v45  ;;  %265 = vst.msk [vmem:[#allocation2 + $0xf0] sm:$0xff] %vm3509_vm3, %v3526_v45  ;;  %v591_v27 = vsel %vm559_vm4, %v2152_v0, 0.0  ;;  %v1695_v0 = vsel %vm2646_vm9, 1.0, %v3526_v45  ;;  %1829 = vpow2.f32 %v809_v43  ;;  %v766_v43 = vsub.f32 %v2219_v17, %v2419_v54 }
 0x15e   : > { %v475_v55 = vpop.permute.xlu0 %474  ;;  %266 = vst.msk [vmem:[#allocation2 + $0xf8] sm:$0xff] %vm3509_vm3, %v3526_v45  ;;  %268 = vst.msk [vmem:[#allocation3 + $0x8] sm:$0xff] %vm3509_vm3, %v3526_v45  ;;  %1831 = vpow2.f32 %v811_v29  ;;  %vm365_vm4 = vcmp.ge.s32.totalorder %v2320_v26, 0 }
 0x15f   : > { %v2493_v1 = vpop.permute.xlu1 %477  ;;  %vm561_vm2 = vcmp.eq.s32.totalorder %v2477_v51, %v475_v55  ;;  %269 = vst.msk [vmem:[#allocation3 + $0x10] sm:$0xff] %vm3509_vm3, %v3526_v45  ;;  %270 = vst.msk [vmem:[#allocation3 + $0x18] sm:$0xff] %vm3509_vm3, %v3526_v45 }
 0x160   : > { %v2499_v3 = vsel %vm561_vm2, %v2168_v4, 0.0  ;;  %271 = vst.msk [vmem:[#allocation3 + $0x20] sm:$0xff] %vm3509_vm3, %v3526_v45  ;;  %272 = vst.msk [vmem:[#allocation3 + $0x28] sm:$0xff] %vm3509_vm3, %v3526_v45  ;;  %vm562_vm5 = vcmp.eq.s32.totalorder %v2477_v51, %v2493_v1  ;;  %vm399_vm2 = vcmp.lt.s32.totalorder %v2328_v32, 128 }
 0x161   : > { %273 = vst.msk [vmem:[#allocation3 + $0x30] sm:$0xff] %vm3509_vm3, %v3526_v45  ;;  %274 = vst.msk [vmem:[#allocation3 + $0x38] sm:$0xff] %vm3509_vm3, %v3526_v45  ;;  %865 = vadd.xlane.f32.xlu1 %v2496_v41  ;;  %629 = vadd.xlane.f32.xlu0 %v2499_v3  ;;  %v594_v55 = vsel %vm562_vm5, %v2171_v5, 0.0  ;;  %v1166_v41 = vld [vmem:[#allocation3] sm:$0xff]  ;;  %v1824_v5 = vpop.eup %1823  ;;  %vm397_vm5 = vcmp.lt.s32.totalorder %v2320_v26, 128 }
 0x162   : > { %275 = vst.msk [vmem:[#allocation3 + $0x40] sm:$0xff] %vm3509_vm3, %v3526_v45  ;;  %276 = vst.msk [vmem:[#allocation3 + $0x48] sm:$0xff] %vm3509_vm3, %v3526_v45  ;;  %v481_v4 = vpop.permute.xlu0 %480  ;;  %v1826_v61 = vpop.eup %1825 }
 0x163   : > { %277 = vst.msk [vmem:[#allocation3 + $0x50] sm:$0xff] %vm3509_vm3, %v3526_v45  ;;  %278 = vst.msk [vmem:[#allocation3 + $0x58] sm:$0xff] %vm3509_vm3, %v3526_v45  ;;  %v484_v58 = vpop.permute.xlu1 %483  ;;  %vm563_vm8 = vcmp.eq.s32.totalorder %v2477_v51, %v481_v4  ;;  %v1262_v4 = vadd.f32 %v1695_v0, %v1166_v41 }
 0x164   : > { %279 = vst.msk [vmem:[#allocation3 + $0x60] sm:$0xff] %vm3509_vm3, %v3526_v45  ;;  %280 = vst.msk [vmem:[#allocation3 + $0x68] sm:$0xff] %vm3509_vm3, %v3526_v45  ;;  %v595_v3 = vsel %vm563_vm8, %v2176_v6, 0.0  ;;  %vm564_vm11 = vcmp.eq.s32.totalorder %v2477_v51, %v484_v58  ;;  %v592_v6 = vsel %vm560_vm10, %v2160_v2, 0.0  ;;  %vm368_vm8 = vcmp.ge.s32.totalorder %v2325_v31, 0 }
 0x165   : > { %281 = vst.msk [vmem:[#allocation3 + $0x70] sm:$0xff] %vm3509_vm3, %v3526_v45  ;;  %282 = vst.msk [vmem:[#allocation3 + $0x78] sm:$0xff] %vm3509_vm3, %v3526_v45  ;;  %625 = vadd.xlane.f32.xlu1 %v591_v27  ;;  %631 = vadd.xlane.f32.xlu0 %v594_v55  ;;  %v765_v27 = vsub.f32 %v2216_v16, %v2422_v56  ;;  %v596_v46 = vsel %vm564_vm11, %v2179_v7, 0.0  ;;  %v1167_v0 = vld [vmem:[#allocation3 + $0x8] sm:$0xff]  ;;  %v1696_v7 = vsel %vm2673_vm15, 1.0, %v3526_v45  ;;  %vm400_vm11 = vcmp.lt.s32.totalorder %v2325_v31, 128 }
 0x166   : > { %283 = vst.msk [vmem:[#allocation3 + $0x80] sm:$0xff] %vm3509_vm3, %v3526_v45  ;;  %284 = vst.msk [vmem:[#allocation3 + $0x88] sm:$0xff] %vm3509_vm3, %v3526_v45  ;;  %v487_v49 = vpop.permute.xlu0 %486 }
 0x167   : > { %285 = vst.msk [vmem:[#allocation3 + $0x90] sm:$0xff] %vm3509_vm3, %v3526_v45  ;;  %286 = vst.msk [vmem:[#allocation3 + $0x98] sm:$0xff] %vm3509_vm3, %v3526_v45  ;;  %v490_v1 = vpop.permute.xlu1 %489  ;;  %vm565_vm14 = vcmp.eq.s32.totalorder %v2477_v51, %v487_v49  ;;  %v813_v58 = vmul.f32 1.442695, %v765_v27  ;;  %v767_v49 = vsub.f32 %v2224_v18, %v2427_v53 }
 0x168   : > { %287 = vst.msk [vmem:[#allocation3 + $0xa0] sm:$0xff] %vm3509_vm3, %v3526_v45  ;;  %288 = vst.msk [vmem:[#allocation3 + $0xa8] sm:$0xff] %vm3509_vm3, %v3526_v45  ;;  %v597_v2 = vsel %vm565_vm14, %v2184_v8, 0.0  ;;  %vm566_vm0 = vcmp.eq.s32.totalorder %v2477_v51, %v490_v1  ;;  %v1828_v8 = vpop.eup %1827  ;;  %vm401_vm14 = vcmp.lt.s32.totalorder %v2336_v36, 128 }
 0x169   : > { %289 = vst.msk [vmem:[#allocation3 + $0xb0] sm:$0xff] %vm3509_vm3, %v3526_v45  ;;  %290 = vst.msk [vmem:[#allocation3 + $0xb8] sm:$0xff] %vm3509_vm3, %v3526_v45  ;;  %867 = vadd.xlane.f32.xlu1 %v1824_v5  ;;  %633 = vadd.xlane.f32.xlu0 %v595_v3  ;;  %v1263_v5 = vadd.f32 %v1696_v7, %v1167_v0  ;;  %1833 = vpow2.f32 %v813_v58  ;;  %v598_v1 = vsel %vm566_vm0, %v2187_v9, 0.0  ;;  %v817_v27 = vmul.f32 1.442695, %v767_v49 }
 0x16a   : > { %291 = vst.msk [vmem:[#allocation3 + $0xc0] sm:$0xff] %vm3509_vm3, %v3526_v45  ;;  %292 = vst.msk [vmem:[#allocation3 + $0xc8] sm:$0xff] %vm3509_vm3, %v3526_v45  ;;  %v493_v3 = vpop.permute.xlu0 %492  ;;  %v1830_v9 = vpop.eup %1829 }
 0x16b   : > { %293 = vst.msk [vmem:[#allocation3 + $0xd0] sm:$0xff] %vm3509_vm3, %v3526_v45  ;;  %294 = vst.msk [vmem:[#allocation3 + $0xd8] sm:$0xff] %vm3509_vm3, %v3526_v45  ;;  %v2662_v55 = vpop.permute.xlu1 %495  ;;  %vm567_vm6 = vcmp.eq.s32.totalorder %v2477_v51, %v493_v3  ;;  %v1832_v3 = vpop.eup %1831 }
 0x16c   : > { %295 = vst.msk [vmem:[#allocation3 + $0xe0] sm:$0xff] %vm3509_vm3, %v3526_v45  ;;  %296 = vst.msk [vmem:[#allocation3 + $0xe8] sm:$0xff] %vm3509_vm3, %v3526_v45  ;;  %v599_v26 = vsel %vm567_vm6, %v2192_v10, 0.0  ;;  %vm568_vm12 = vcmp.eq.s32.totalorder %v2477_v51, %v2662_v55 }
 0x16d   : > { %297 = vst.msk [vmem:[#allocation3 + $0xf0] sm:$0xff] %vm3509_vm3, %v3526_v45  ;;  %298 = vst.msk [vmem:[#allocation3 + $0xf8] sm:$0xff] %vm3509_vm3, %v3526_v45  ;;  %627 = vadd.xlane.f32.xlu1 %v592_v6  ;;  %635 = vadd.xlane.f32.xlu0 %v596_v46  ;;  %v768_v6 = vsub.f32 %v2227_v19, %v2425_v48  ;;  %v1170_v19 = vld [vmem:[#allocation3 + $0x20] sm:$0xff]  ;;  %v600_v49 = vsel %vm568_vm12, %v2195_v11, 0.0  ;;  %v1171_v11 = vld [vmem:[#allocation3 + $0x28] sm:$0xff]  ;;  %vm402_vm12 = vcmp.lt.s32.totalorder %v2333_v35, 128 }
 0x16e   : > { %1294 = vst.msk [vmem:[#allocation3] sm:$0xff] %vm3509_vm3, %v1262_v4  ;;  %v815_v4 = vmul.f32 1.442695, %v766_v43  ;;  %1295 = vst.msk [vmem:[#allocation3 + $0x8] sm:$0xff] %vm3509_vm3, %v1263_v5  ;;  %v769_v5 = vsub.f32 %v2232_v20, %v2433_v44  ;;  %v3749_v20 = vld [vmem:[#allocation17_spill] sm:$0xff] }
 0x16f   : > { %v2671_v52 = vpop.permute.xlu1 %498  ;;  %vm2697_vm7 = vmand %vm367_vm1, %vm399_vm2  ;;  %v819_v7 = vmul.f32 1.442695, %v768_v6  ;;  %vm366_vm1 = vcmp.ge.s32.totalorder %v2317_v63, 0  ;;  %vm398_vm2 = vcmp.lt.s32.totalorder %v2317_v63, 128 }
 0x170   : > { %1835 = vpow2.f32 %v815_v4  ;;  %vm2703_vm10 = vmand %vm365_vm4, %vm397_vm5  ;;  %v1699_v43 = vsel %vm2697_vm7, 1.0, %v3526_v45  ;;  %vm569_vm4 = vcmp.eq.s32.totalorder %v2477_v51, %v2671_v52  ;;  %v821_v31 = vmul.f32 1.442695, %v769_v5  ;;  %v1173_v5 = vld [vmem:[#allocation3 + $0x38] sm:$0xff] }
 0x171   : > { %869 = vadd.xlane.f32.xlu1 %v1826_v61  ;;  %637 = vadd.xlane.f32.xlu0 %v597_v2  ;;  %v1168_v61 = vld [vmem:[#allocation3 + $0x10] sm:$0xff]  ;;  %v1697_v10 = vsel %vm2703_vm10, 1.0, %v3526_v45  ;;  %v1266_v2 = vadd.f32 %v1699_v43, %v1170_v19  ;;  %1837 = vpow2.f32 %v817_v27  ;;  %vm2732_vm0 = vmand %vm368_vm8, %vm400_vm11  ;;  %v3592_v27 = vmov 0 }
 0x172   : > { %v1264_v0 = vadd.f32 %v1697_v10, %v1168_v61  ;;  %v1700_v55 = vsel %vm2732_vm0, 1.0, %v3526_v45  ;;  %1839 = vpow2.f32 %v819_v7  ;;  %vm2749_vm5 = vmand %vm369_vm13, %vm401_vm14  ;;  %v601_v6 = vsel %vm569_vm4, %v2200_v12, 0.0  ;;  %v508_v7 = vpop.permute.xlu0 %507 }
 0x173   : > { %v2684_v29 = vpop.permute.xlu1 %501  ;;  %1298 = vst.msk [vmem:[#allocation3 + $0x20] sm:$0xff] %vm3509_vm3, %v1266_v2  ;;  %v3593_v27 = vsel %vm2749_vm5, 4294967295, %v3592_v27  ;;  %vm2757_vm6 = vmand %vm366_vm1, %vm398_vm2  ;;  %v1701_v36 = vsel %vm2749_vm5, 1.0, %v3526_v45  ;;  %vm370_vm11 = vcmp.ge.s32.totalorder %v2333_v35, 0  ;;  %1841 = vpow2.f32 %v821_v31 }
 0x174   : > { %1296 = vst.msk [vmem:[#allocation3 + $0x10] sm:$0xff] %vm3509_vm3, %v1264_v0  ;;  %vm570_vm8 = vcmp.eq.s32.totalorder %v2477_v51, %v2684_v29  ;;  %v1698_v12 = vsel %vm2757_vm6, 1.0, %v3526_v45  ;;  %v771_v10 = vsub.f32 %v2243_v23, %v2435_v34  ;;  %vm2785_vm14 = vmand %vm370_vm11, %vm402_vm12  ;;  %v3596_v23 = vmov 0 }
 0x175   : > { %871 = vadd.xlane.f32.xlu1 %v1828_v8  ;;  %639 = vadd.xlane.f32.xlu0 %v598_v1  ;;  %v1267_v8 = vadd.f32 %v1700_v55, %v1171_v11  ;;  %v770_v1 = vsub.f32 %v2235_v21, %v2430_v33  ;;  %v1172_v21 = vld [vmem:[#allocation3 + $0x30] sm:$0xff]  ;;  %v602_v0 = vsel %vm570_vm8, %v2203_v13, 0.0  ;;  %v3597_v23 = vsel %vm2785_vm14, 4294967295, %v3596_v23  ;;  %v1435_v31 = vld [vmem:[#allocation3] sm:$0xff] }
 0x176   : > { %v1834_v52 = vpop.eup %1833  ;;  %v1268_v19 = vadd.f32 %v1701_v36, %v1172_v21  ;;  %v772_v13 = vsub.f32 %v2240_v22, %v2437_v50  ;;  %v825_v29 = vmul.f32 1.442695, %v771_v10  ;;  %vm371_vm1 = vcmp.ge.s32.totalorder %v2344_v40, 0  ;;  %v3603_v36 = vld [vmem:[#allocation10_spill] sm:$0xff] }
 0x177   : > { %v2695_v46 = vpop.permute.xlu1 %504  ;;  %1299 = vst.msk [vmem:[#allocation3 + $0x28] sm:$0xff] %vm3509_vm3, %v1267_v8  ;;  %v823_v61 = vmul.f32 1.442695, %v770_v1  ;;  %vm403_vm2 = vcmp.lt.s32.totalorder %v2344_v40, 128  ;;  %vm572_vm4 = vcmp.eq.s32.totalorder %v2477_v51, %v508_v7  ;;  %vm404_vm11 = vcmp.lt.s32.totalorder %v2341_v39, 128  ;;  %v1436_v1 = vld [vmem:[#allocation3 + $0x8] sm:$0xff] }
 0x178   : > { %1300 = vst.msk [vmem:[#allocation3 + $0x30] sm:$0xff] %vm3509_vm3, %v1268_v19  ;;  %vm571_vm13 = vcmp.eq.s32.totalorder %v2477_v51, %v2695_v46  ;;  %v827_v22 = vmul.f32 1.442695, %v772_v13  ;;  %v604_v8 = vsel %vm572_vm4, %v2211_v15, 0.0  ;;  %vm2806_vm12 = vmand %vm371_vm1, %vm403_vm2  ;;  %v3598_v40 = vmov 0  ;;  %v1175_v19 = vld [vmem:[#allocation3 + $0x48] sm:$0xff] }
 0x179   : > { %873 = vadd.xlane.f32.xlu1 %v1830_v9  ;;  %641 = vadd.xlane.f32.xlu0 %v599_v26  ;;  %v3594_v9 = vmov 0  ;;  %v1169_v26 = vld [vmem:[#allocation3 + $0x18] sm:$0xff]  ;;  %1843 = vpow2.f32 %v823_v61  ;;  %v603_v11 = vsel %vm571_vm13, %v2208_v14, 0.0  ;;  %v773_v14 = vsub.f32 %v2251_v25, %v2439_v59  ;;  %v3609_v13 = vld [vmem:[#allocation22_spill] sm:$0xff] }
 0x17a   : > { %v3595_v9 = vsel %vm2757_vm6, 4294967295, %v3594_v9  ;;  %v1265_v43 = vadd.f32 %v1698_v12, %v1169_v26  ;;  %1845 = vpow2.f32 %v825_v29  ;;  %v3599_v40 = vsel %vm2806_vm12, 4294967295, %v3598_v40 }
 0x17b   : > { %v2720_v4 = vpop.permute.xlu1 %510  ;;  %vm373_vm13 = vcmp.ge.s32.totalorder %v2352_v42, 0  ;;  %vm405_vm8 = vcmp.lt.s32.totalorder %v2352_v42, 128  ;;  %v1703_v15 = vsel %vm2806_vm12, 1.0, %v3526_v45  ;;  %vm3600_vm1 = vcmp.ge.s32.totalorder %v2341_v39, 0 }
 0x17c   : > { %1297 = vst.msk [vmem:[#allocation3 + $0x18] sm:$0xff] %vm3509_vm3, %v1265_v43  ;;  %vm2823_vm2 = vmand %vm3600_vm1, %vm404_vm11  ;;  %v3601_v21 = vmov 0  ;;  %1847 = vpow2.f32 %v827_v22  ;;  %v774_v26 = vsub.f32 %v3603_v36, %v2441_v30  ;;  %v829_v12 = vmul.f32 1.442695, %v773_v14  ;;  %v3619_v36 = vld [vmem:[#allocation11_spill] sm:$0xff] }
 0x17d   : > { %875 = vadd.xlane.f32.xlu1 %v1832_v3  ;;  %643 = vadd.xlane.f32.xlu0 %v600_v49  ;;  %v1836_v2 = vpop.eup %1835  ;;  %v1702_v3 = vsel %vm2785_vm14, 1.0, %v3526_v45  ;;  %v3602_v21 = vsel %vm2823_vm2, 4294967295, %v3601_v21  ;;  %v1704_v43 = vsel %vm2823_vm2, 1.0, %v3526_v45  ;;  %vm3604_vm4 = vcmask 7168   ;;  %vm2843_vm12 = vmand %vm373_vm13, %vm405_vm8 }
 0x17e   : > { %v1838_v46 = vpop.eup %1837  ;;  %v1269_v35 = vadd.f32 %v1702_v3, %v1173_v5  ;;  %v1467_v10 = vsel %vm3604_vm4, %v1435_v31, 0.0  ;;  %vm3605_vm11 = vmmov %vm3604_vm4  ;;  %v3607_v7 = vmov 0  ;;  %vm374_vm2 = vcmp.ge.s32.totalorder %v3609_v13, 0  ;;  %v3611_v3 = vld [vmem:[#allocation38_spill] sm:$0xff]  ;;  %v3617_v31 = vld [vmem:[#allocation23_spill] sm:$0xff] }
 0x17f   : > { %v2770_v63 = vpop.permute.xlu1 %513  ;;  %v1840_v55 = vpop.eup %1839  ;;  %vm3606_vm1 = vmmov %vm3604_vm4  ;;  %v3608_v7 = vsel %vm2843_vm12, 4294967295, %v3607_v7  ;;  %vm406_vm14 = vcmp.lt.s32.totalorder %v3609_v13, 128  ;;  %v1705_v29 = vsel %vm2843_vm12, 1.0, %v3526_v45  ;;  %v831_v5 = vmul.f32 1.442695, %v774_v26 }
 0x180   : > { %1301 = vst.msk [vmem:[#allocation3 + $0x38] sm:$0xff] %vm3509_vm3, %v1269_v35  ;;  %vm573_vm3 = vcmp.eq.s32.totalorder %v2477_v51, %v2720_v4  ;;  %v1842_v61 = vpop.eup %1841  ;;  %v1176_v4 = vld [vmem:[#allocation3 + $0x50] sm:$0xff]  ;;  %vm3610_vm4 = vmmov %vm3606_vm1  ;;  %1849 = vpow2.f32 %v829_v12 }
 0x181   : > { %877 = vadd.xlane.f32.xlu1 %v1834_v52  ;;  %645 = vadd.xlane.f32.xlu0 %v601_v6  ;;  %v1174_v52 = vld [vmem:[#allocation3 + $0x40] sm:$0xff]  ;;  %v605_v39 = vsel %vm573_vm3, %v2216_v16, 0.0  ;;  %vm574_vm3 = vcmp.eq.s32.totalorder %v2477_v51, %v2770_v63  ;;  %v1437_v16 = vld [vmem:[#allocation3 + $0x10] sm:$0xff]  ;;  %v1272_v42 = vadd.f32 %v1705_v29, %v1176_v4  ;;  %vm3613_vm8 = vmmov %vm3606_vm1  ;;  %1851 = vpow2.f32 %v831_v5 }
 0x182   : > { %v1270_v6 = vadd.f32 %v1703_v15, %v1174_v52  ;;  %v606_v63 = vsel %vm574_vm3, %v2219_v17, 0.0  ;;  %vm3614_vm13 = vmmov %vm3606_vm1  ;;  %v3625_v29 = vld [vmem:[#allocation40_spill] sm:$0xff] }
 0x183   : > { %v2794_v49 = vpop.permute.xlu1 %516  ;;  %1304 = vst.msk [vmem:[#allocation3 + $0x50] sm:$0xff] %vm3614_vm13, %v1272_v42  ;;  %v1438_v17 = vld [vmem:[#allocation3 + $0x18] sm:$0xff]  ;;  %v3626_v42 = vld [vmem:[#allocation14_spill] sm:$0xff] }
 0x184   : > { %1302 = vst.msk [vmem:[#allocation3 + $0x40] sm:$0xff] %vm3606_vm1, %v1270_v6  ;;  %vm375_vm1 = vcmp.ge.s32.totalorder %v3617_v31, 0  ;;  %vm575_vm12 = vcmp.eq.s32.totalorder %v2477_v51, %v2794_v49  ;;  %v3618_v6 = vld [vmem:[#allocation39_spill] sm:$0xff]  ;;  %v777_v5 = vsub.f32 %v3626_v42, %v3625_v29 }
 0x185   : > { %879 = vadd.xlane.f32.xlu1 %v1836_v2  ;;  %647 = vadd.xlane.f32.xlu0 %v602_v0  ;;  %v1468_v2 = vsel %vm3605_vm11, %v1436_v1, 0.0  ;;  %v1271_v0 = vadd.f32 %v1704_v43, %v1175_v19  ;;  %vm2864_vm11 = vmand %vm374_vm2, %vm406_vm14  ;;  %v1177_v1 = vld [vmem:[#allocation3 + $0x58] sm:$0xff]  ;;  %v776_v26 = vsub.f32 %v3619_v36, %v3618_v6 }
 0x186   : > { %v1469_v35 = vadd.f32 %v1468_v2, %v1467_v10  ;;  %v1844_v22 = vpop.eup %1843  ;;  %v1706_v52 = vsel %vm2864_vm11, 1.0, %v3526_v45  ;;  %vm3620_vm14 = vmmov %vm3613_vm8  ;;  %v3624_v10 = vld [vmem:[#allocation25_spill] sm:$0xff]  ;;  %v1178_v2 = vld [vmem:[#allocation3 + $0x60] sm:$0xff] }
 0x187   : > { %v2817_v25 = vpop.permute.xlu1 %519  ;;  %1303 = vst.msk [vmem:[#allocation3 + $0x48] sm:$0xff] %vm3610_vm4, %v1271_v0  ;;  %vm407_vm4 = vcmp.lt.s32.totalorder %v3617_v31, 128  ;;  %v1273_v15 = vadd.f32 %v1706_v52, %v1177_v1  ;;  %v1846_v43 = vpop.eup %1845  ;;  %v1472_v49 = vsel %vm3620_vm14, %v1438_v17, 0.0  ;;  %vm3621_vm2 = vmmov %vm3613_vm8  ;;  %vm408_vm13 = vcmp.lt.s32.totalorder %v3624_v10, 128  ;;  %v1440_v31 = vld [vmem:[#allocation3 + $0x28] sm:$0xff]  ;;  %v3632_v36 = vld [vmem:[#allocation41_spill] sm:$0xff] }
 0x188   : > { %vm2884_vm3 = vmand %vm375_vm1, %vm407_vm4  ;;  %v835_v4 = vmul.f32 1.442695, %v776_v26  ;;  %v1179_v17 = vld [vmem:[#allocation3 + $0x68] sm:$0xff]  ;;  %v526_v52 = vpop.permute.xlu0 %525  ;;  %v3633_v26 = vld [vmem:[#allocation13_spill] sm:$0xff] }
 0x189   : > { %881 = vadd.xlane.f32.xlu1 %v1838_v46  ;;  %649 = vadd.xlane.f32.xlu0 %v603_v11  ;;  %v3612_v46 = vld [vmem:[#allocation12_spill] sm:$0xff]  ;;  %1305 = vst.msk [vmem:[#allocation3 + $0x58] sm:$0xff] %vm3621_vm2, %v1273_v15  ;;  %v1707_v0 = vsel %vm2884_vm3, 1.0, %v3526_v45  ;;  %vm3627_vm1 = vmmov %vm3621_vm2 }
 0x18a   : > { %v775_v11 = vsub.f32 %v3612_v46, %v3611_v3  ;;  %vm3628_vm4 = vmmov %vm3627_vm1  ;;  %v1949_v3 = vld [vmem:[%s2306_s6 + $0xe0] sm:$0xff] }
 0x18b   : > { %v523_v14 = vpop.permute.xlu1 %522 }
 0x18c   : > { %v833_v12 = vmul.f32 1.442695, %v775_v11  ;;  %v1848_v11 = vpop.eup %1847 }
 0x18d   : > { %883 = vadd.xlane.f32.xlu1 %v1840_v55  ;;  %651 = vadd.xlane.f32.xlu0 %v604_v8  ;;  %v1470_v55 = vsel %vm3613_vm8, %v1437_v16, 0.0  ;;  %v3615_v8 = vmov 0  ;;  %vm376_vm8 = vcmp.ge.s32.totalorder %v3624_v10, 0  ;;  %v1274_v16 = vadd.f32 %v1707_v0, %v1178_v2  ;;  %v3638_v0 = vld [vmem:[#allocation24_spill] sm:$0xff] }
 0x18e   : > { %v3616_v8 = vsel %vm2864_vm11, 4294967295, %v3615_v8  ;;  %v1471_v19 = vadd.f32 %v1470_v55, %v1469_v35  ;;  %1853 = vpow2.f32 %v833_v12  ;;  %v1929_v35 = vld [vmem:[%s2149_s30 + $0x98] sm:$0xff]  ;;  %vm2906_vm14 = vmand %vm376_vm8, %vm408_vm13  ;;  %v3631_v55 = vld [vmem:[#allocation26_spill] sm:$0xff]  ;;  %vm577_vm11 = vcmp.eq.s32.totalorder %v2477_v51, %v523_v14 }
 0x18f   : > { %v2895_v13 = vpop.permute.xlu1 %528  ;;  %1306 = vst.msk [vmem:[#allocation3 + $0x60] sm:$0xff] %vm3628_vm4, %v1274_v16  ;;  %vm377_vm2 = vcmp.ge.s32.totalorder %v3631_v55, 0  ;;  %v1708_v1 = vsel %vm2906_vm14, 1.0, %v3526_v45  ;;  %1855 = vpow2.f32 %v835_v4  ;;  %v778_v12 = vsub.f32 %v3633_v26, %v3632_v36  ;;  %v1930_v14 = vld [vmem:[%s2149_s30 + $0xa0] sm:$0xff]  ;;  %vm3634_vm8 = vmmov %vm3627_vm1  ;;  %v1441_v16 = vld [vmem:[#allocation3 + $0x30] sm:$0xff] }
 0x190   : > { %v1473_v46 = vadd.f32 %v1472_v49, %v1471_v19  ;;  %v1275_v15 = vadd.f32 %v1708_v1, %v1179_v17  ;;  %v837_v19 = vmul.f32 1.442695, %v777_v5  ;;  %v609_v10 = vsel %vm577_vm11, %v1930_v14, 0.0  ;;  %vm3635_vm13 = vmmov %vm3627_vm1  ;;  %v1180_v4 = vld [vmem:[#allocation3 + $0x70] sm:$0xff]  ;;  %v532_v1 = vpop.permute.xlu0 %531 }
 0x191   : > { %885 = vadd.xlane.f32.xlu1 %v1842_v61  ;;  %653 = vadd.xlane.f32.xlu0 %v605_v39  ;;  %v607_v61 = vsel %vm575_vm12, %v2224_v18, 0.0  ;;  %v3622_v39 = vmov 0  ;;  %vm576_vm12 = vcmp.eq.s32.totalorder %v2477_v51, %v2817_v25  ;;  %v1439_v18 = vld [vmem:[#allocation3 + $0x20] sm:$0xff]  ;;  %v3636_v2 = vmov 0  ;;  %vm3640_vm11 = vmmov %vm3634_vm8  ;;  %v3644_v26 = vld [vmem:[#allocation28_spill] sm:$0xff] }
 0x192   : > { %v3623_v39 = vsel %vm2884_vm3, 4294967295, %v3622_v39  ;;  %v608_v25 = vsel %vm576_vm12, %v1929_v35, 0.0  ;;  %vm409_vm3 = vcmp.lt.s32.totalorder %v3631_v55, 128  ;;  %1307 = vst.msk [vmem:[#allocation3 + $0x68] sm:$0xff] %vm3635_vm13, %v1275_v15  ;;  %vm410_vm4 = vcmp.lt.s32.totalorder %v3638_v0, 128  ;;  %v3639_v35 = vld [vmem:[#allocation42_spill] sm:$0xff] }
 0x193   : > { %v2918_v49 = vpop.permute.xlu1 %534  ;;  %vm2927_vm12 = vmand %vm377_vm2, %vm409_vm3  ;;  %1857 = vpow2.f32 %v837_v19  ;;  %v3642_v15 = vmov 0  ;;  %vm411_vm13 = vcmp.lt.s32.totalorder %v3644_v26, 128  ;;  %v1181_v19 = vld [vmem:[#allocation3 + $0x78] sm:$0xff] }
 0x194   : > { %v3637_v2 = vsel %vm2927_vm12, 4294967295, %v3636_v2  ;;  %v1709_v42 = vsel %vm2927_vm12, 1.0, %v3526_v45  ;;  %vm3641_vm3 = vmmov %vm3634_vm8  ;;  %vm580_vm12 = vcmp.eq.s32.totalorder %v2477_v51, %v532_v1 }
 0x195   : > { %887 = vadd.xlane.f32.xlu1 %v1844_v22  ;;  %655 = vadd.xlane.f32.xlu0 %v606_v63  ;;  %v1474_v22 = vsel %vm3627_vm1, %v1439_v18, 0.0  ;;  %v3629_v63 = vmov 0  ;;  %v1476_v18 = vsel %vm3634_vm8, %v1440_v31, 0.0  ;;  %vm378_vm1 = vcmp.ge.s32.totalorder %v3638_v0, 0  ;;  %v1932_v31 = vld [vmem:[%s2149_s30 + $0xa8] sm:$0xff] }
 0x196   : > { %v3630_v63 = vsel %vm2906_vm14, 4294967295, %v3629_v63  ;;  %vm578_vm14 = vcmp.eq.s32.totalorder %v2477_v51, %v526_v52  ;;  %v1276_v5 = vadd.f32 %v1709_v42, %v1180_v4  ;;  %v1478_v52 = vsel %vm3640_vm11, %v1441_v16, 0.0  ;;  %vm2949_vm2 = vmand %vm378_vm1, %vm410_vm4  ;;  %v1934_v42 = vld [vmem:[%s2149_s30 + $0xb0] sm:$0xff] }
 0x197   : > { %v610_v17 = vsel %vm578_vm14, %v1932_v31, 0.0  ;;  %v3643_v15 = vsel %vm2949_vm2, 4294967295, %v3642_v15  ;;  %vm379_vm8 = vcmp.ge.s32.totalorder %v3644_v26, 0  ;;  %vm579_vm14 = vcmp.eq.s32.totalorder %v2477_v51, %v2895_v13  ;;  %vm3646_vm1 = vmmov %vm3641_vm3  ;;  %v3650_v31 = vld [vmem:[#allocation30_spill] sm:$0xff] }
 0x198   : > { %1308 = vst.msk [vmem:[#allocation3 + $0x70] sm:$0xff] %vm3641_vm3, %v1276_v5  ;;  %v611_v5 = vsel %vm579_vm14, %v1934_v42, 0.0  ;;  %vm3647_vm4 = vmmov %vm3646_vm1  ;;  %vm380_vm3 = vcmp.ge.s32.totalorder %v3650_v31, 0 }
 0x199   : > { %889 = vadd.xlane.f32.xlu1 %v1846_v43  ;;  %657 = vadd.xlane.f32.xlu0 %v607_v61  ;;  %v1475_v43 = vadd.f32 %v1474_v22, %v1473_v46  ;;  %v1850_v61 = vpop.eup %1849  ;;  %v839_v46 = vmul.f32 1.442695, %v778_v12  ;;  %v1442_v12 = vld [vmem:[#allocation3 + $0x38] sm:$0xff]  ;;  %vm2974_vm11 = vmand %vm379_vm8, %vm411_vm13 }
 0x19a   : > { %v1852_v55 = vpop.eup %1851  ;;  %vm3651_vm8 = vmmov %vm3646_vm1 }
 0x19b   : > { %v1477_v22 = vadd.f32 %v1476_v18, %v1475_v43  ;;  %v1710_v43 = vsel %vm2949_vm2, 1.0, %v3526_v45  ;;  %1859 = vpow2.f32 %v839_v46  ;;  %v3645_v18 = vld [vmem:[#allocation43_spill] sm:$0xff]  ;;  %v1854_v13 = vpop.eup %1853  ;;  %v3648_v46 = vmov 0  ;;  %vm3652_vm13 = vmmov %vm3646_vm1 }
 0x19c   : > { %v1277_v14 = vadd.f32 %v1710_v43, %v1181_v19  ;;  %v3649_v46 = vsel %vm2974_vm11, 4294967295, %v3648_v46  ;;  %vm412_vm2 = vcmp.lt.s32.totalorder %v3650_v31, 128  ;;  %v1856_v43 = vpop.eup %1855 }
 0x19d   : > { %891 = vadd.xlane.f32.xlu1 %v1848_v11  ;;  %659 = vadd.xlane.f32.xlu0 %v608_v25  ;;  %v2938_v11 = vld [vmem:[%s2149_s30 + $0xf0] sm:$0xff]  ;;  %v1479_v4 = vadd.f32 %v1478_v52, %v1477_v22  ;;  %v1182_v22 = vld [vmem:[#allocation3 + $0x80] sm:$0xff]  ;;  %v538_v52 = vpop.permute.xlu0 %537  ;;  %vm2991_vm14 = vmand %vm380_vm3, %vm412_vm2 }
 0x19e   : > { %v779_v25 = vsub.f32 %v2938_v11, %v3639_v35  ;;  %1309 = vst.msk [vmem:[#allocation3 + $0x78] sm:$0xff] %vm3647_vm4, %v1277_v14  ;;  %v1935_v14 = vld [vmem:[%s2149_s30 + $0xb8] sm:$0xff]  ;;  %vm3656_vm2 = vmmov %vm3651_vm8 }
 0x19f   : > { %v612_v42 = vsel %vm580_vm12, %v1935_v14, 0.0  ;;  %vm582_vm12 = vcmp.eq.s32.totalorder %v2477_v51, %v538_v52  ;;  %vm3657_vm3 = vmmov %vm3656_vm2  ;;  %v3658_v52 = vmov 0 }
 0x1a0   : > { %v841_v16 = vmul.f32 1.442695, %v779_v25  ;;  %v1443_v25 = vld [vmem:[#allocation3 + $0x40] sm:$0xff] }
 0x1a1   : > { %893 = vadd.xlane.f32.xlu1 %v1850_v61  ;;  %661 = vadd.xlane.f32.xlu0 %v609_v10  ;;  %v2960_v61 = vpop.permute.xlu1 %540  ;;  %v2963_v10 = vld [vmem:[%s2149_s30 + $0xf8] sm:$0xff]  ;;  %v1482_v1 = vsel %vm3651_vm8, %v1443_v25, 0.0  ;;  %v1858_v25 = vpop.eup %1857 }
 0x1a2   : > { %v780_v0 = vsub.f32 %v2963_v10, %v3645_v18  ;;  %1861 = vpow2.f32 %v841_v16  ;;  %v1444_v16 = vld [vmem:[#allocation3 + $0x48] sm:$0xff] }
 0x1a3   : > { %v1484_v14 = vsel %vm3656_vm2, %v1444_v16, 0.0 }
 0x1a5   : > { %895 = vadd.xlane.f32.xlu1 %v1852_v55  ;;  %663 = vadd.xlane.f32.xlu0 %v610_v17  ;;  %v1480_v55 = vsel %vm3646_vm1, %v1442_v12, 0.0  ;;  %v1711_v17 = vsel %vm2974_vm11, 1.0, %v3526_v45  ;;  %v843_v12 = vmul.f32 1.442695, %v780_v0  ;;  %v544_v18 = vpop.permute.xlu1 %543  ;;  %v3655_v0 = vld [vmem:[#allocation32_spill] sm:$0xff] }
 0x1a6   : > { %v1278_v26 = vadd.f32 %v1711_v17, %v1182_v22  ;;  %v1481_v19 = vadd.f32 %v1480_v55, %v1479_v4  ;;  %vm381_vm1 = vcmp.ge.s32.totalorder %v3655_v0, 0  ;;  %vm413_vm4 = vcmp.lt.s32.totalorder %v3655_v0, 128  ;;  %v1183_v4 = vld [vmem:[#allocation3 + $0x88] sm:$0xff] }
 0x1a7   : > { %1863 = vpow2.f32 %v843_v12  ;;  %v1936_v22 = vld [vmem:[%s2149_s30 + $0xc8] sm:$0xff]  ;;  %vm3010_vm8 = vmand %vm381_vm1, %vm413_vm4 }
 0x1a8   : > { %1310 = vst.msk [vmem:[#allocation3 + $0x80] sm:$0xff] %vm3652_vm13, %v1278_v26  ;;  %v1483_v31 = vadd.f32 %v1482_v1, %v1481_v19  ;;  %v614_v17 = vsel %vm582_vm12, %v1936_v22, 0.0  ;;  %v3002_v26 = vpop.permute.xlu0 %546  ;;  %v3659_v52 = vsel %vm3010_vm8, 4294967295, %v3658_v52  ;;  %v3660_v12 = vld [vmem:[#allocation35_spill] sm:$0xff]  ;;  %vm584_vm12 = vcmp.eq.s32.totalorder %v2477_v51, %v544_v18  ;;  %v1445_v19 = vld [vmem:[#allocation3 + $0x50] sm:$0xff]  ;;  %vm3661_vm1 = vmmov %vm3656_vm2 }
 0x1a9   : > { %897 = vadd.xlane.f32.xlu1 %v1854_v13  ;;  %665 = vadd.xlane.f32.xlu0 %v611_v5  ;;  %v3653_v13 = vmov 0  ;;  %v1712_v5 = vsel %vm2991_vm14, 1.0, %v3526_v45  ;;  %vm382_vm13 = vcmp.ge.s32.totalorder %v3660_v12, 0  ;;  %v550_v1 = vpop.permute.xlu1 %549  ;;  %v1486_v22 = vsel %vm3661_vm1, %v1445_v19, 0.0  ;;  %vm3662_vm4 = vmmov %vm3661_vm1 }
 0x1aa   : > { %v3654_v13 = vsel %vm2991_vm14, 4294967295, %v3653_v13  ;;  %v1279_v55 = vadd.f32 %v1712_v5, %v1183_v4  ;;  %vm414_vm14 = vcmp.lt.s32.totalorder %v3660_v12, 128  ;;  %v1485_v16 = vadd.f32 %v1484_v14, %v1483_v31  ;;  %v1860_v4 = vpop.eup %1859  ;;  %v1937_v5 = vld [vmem:[%s2149_s30 + $0xd8] sm:$0xff] }
 0x1ab   : > { %vm3027_vm2 = vmand %vm382_vm13, %vm414_vm14  ;;  %v3663_v18 = vmov 0  ;;  %v1446_v31 = vld [vmem:[#allocation3 + $0x58] sm:$0xff] }
 0x1ac   : > { %1311 = vst.msk [vmem:[#allocation3 + $0x88] sm:$0xff] %vm3657_vm3, %v1279_v55  ;;  %v616_v55 = vsel %vm584_vm12, %v1937_v5, 0.0  ;;  %v3664_v18 = vsel %vm3027_vm2, 4294967295, %v3663_v18  ;;  %vm586_vm12 = vcmp.eq.s32.totalorder %v2477_v51, %v550_v1  ;;  %v1714_v14 = vsel %vm3027_vm2, 1.0, %v3526_v45  ;;  %v556_v12 = vpop.permute.xlu0 %555  ;;  %vm3666_vm14 = vmmov %vm3661_vm1 }
 0x1ad   : > { %899 = vadd.xlane.f32.xlu1 %v1856_v43  ;;  %667 = vadd.xlane.f32.xlu0 %v612_v42  ;;  %v1184_v43 = vld [vmem:[#allocation3 + $0x90] sm:$0xff]  ;;  %v1713_v42 = vsel %vm3010_vm8, 1.0, %v3526_v45  ;;  %v1488_v35 = vsel %vm3666_vm14, %v1446_v31, 0.0  ;;  %vm3667_vm13 = vmmov %vm3661_vm1  ;;  %v3668_v1 = vmov 0  ;;  %vm588_vm11 = vcmp.eq.s32.totalorder %v2477_v51, %v556_v12 }
 0x1ae   : > { %v1280_v0 = vadd.f32 %v1713_v42, %v1184_v43  ;;  %v1487_v43 = vadd.f32 %v1486_v22, %v1485_v16  ;;  %v1447_v16 = vld [vmem:[#allocation3 + $0x60] sm:$0xff]  ;;  %v3671_v12 = vmov 0 }
 0x1af   : > { %v1862_v42 = vpop.eup %1861 }
 0x1b0   : > { %1312 = vst.msk [vmem:[#allocation3 + $0x90] sm:$0xff] %vm3662_vm4, %v1280_v0  ;;  %v1938_v0 = vld [vmem:[%s2149_s30 + $0xe8] sm:$0xff] }
 0x1b1   : > { %901 = vadd.xlane.f32.xlu1 %v1858_v25  ;;  %671 = vadd.xlane.f32.xlu0 %v614_v17  ;;  %v3665_v25 = vld [vmem:[#allocation36_spill] sm:$0xff]  ;;  %v1185_v17 = vld [vmem:[#allocation3 + $0x98] sm:$0xff]  ;;  %v618_v5 = vsel %vm586_vm12, %v1938_v0, 0.0 }
 0x1b2   : > { %vm383_vm3 = vcmp.ge.s32.totalorder %v3665_v25, 0  ;;  %vm415_vm8 = vcmp.lt.s32.totalorder %v3665_v25, 128  ;;  %v1281_v19 = vadd.f32 %v1714_v14, %v1185_v17  ;;  %v1489_v17 = vadd.f32 %v1488_v35, %v1487_v43  ;;  %v1940_v14 = vld [vmem:[%s2306_s6 + $0xb0] sm:$0xff]  ;;  %v1187_v35 = vld [vmem:[#allocation3 + $0xa8] sm:$0xff] }
 0x1b3   : > { %vm3044_vm1 = vmand %vm383_vm3, %vm415_vm8  ;;  %vm385_vm8 = vcmp.ge.s32.totalorder %v1940_v14, 0  ;;  %v1448_v43 = vld [vmem:[#allocation3 + $0x68] sm:$0xff] }
 0x1b4   : > { %1313 = vst.msk [vmem:[#allocation3 + $0x98] sm:$0xff] %vm3667_vm13, %v1281_v19  ;;  %v3669_v1 = vsel %vm3044_vm1, 4294967295, %v3668_v1  ;;  %v1715_v22 = vsel %vm3044_vm1, 1.0, %v3526_v45  ;;  %v1864_v25 = vpop.eup %1863  ;;  %v620_v19 = vsel %vm588_vm11, %v2963_v10, 0.0  ;;  %vm3670_vm3 = vmmov %vm3667_vm13  ;;  %vm417_vm13 = vcmp.lt.s32.totalorder %v1940_v14, 128 }
 0x1b5   : > { %903 = vadd.xlane.f32.xlu1 %v1860_v4  ;;  %675 = vadd.xlane.f32.xlu0 %v616_v55  ;;  %v1939_v4 = vld [vmem:[%s2306_s6 + $0xa8] sm:$0xff]  ;;  %v1186_v55 = vld [vmem:[#allocation3 + $0xa0] sm:$0xff]  ;;  %vm3673_vm14 = vmmov %vm3670_vm3  ;;  %vm581_vm1 = vcmp.eq.s32.totalorder %v2477_v51, %v2918_v49  ;;  %v3676_v49 = vmov 0 }
 0x1b6   : > { %vm384_vm4 = vcmp.ge.s32.totalorder %v1939_v4, 0  ;;  %vm416_vm2 = vcmp.lt.s32.totalorder %v1939_v4, 128  ;;  %v1282_v31 = vadd.f32 %v1715_v22, %v1186_v55  ;;  %vm3674_vm11 = vmmov %vm3670_vm3  ;;  %v1449_v55 = vld [vmem:[#allocation3 + $0x70] sm:$0xff] }
 0x1b7   : > { %vm3057_vm12 = vmand %vm384_vm4, %vm416_vm2  ;;  %v1492_v4 = vsel %vm3674_vm11, %v1448_v43, 0.0  ;;  %vm583_vm11 = vcmp.eq.s32.totalorder %v2477_v51, %v2960_v61  ;;  %v1943_v43 = vld [vmem:[%s2306_s6 + $0xc8] sm:$0xff] }
 0x1b8   : > { %1314 = vst.msk [vmem:[#allocation3 + $0xa0] sm:$0xff] %vm3670_vm3, %v1282_v31  ;;  %v3672_v12 = vsel %vm3057_vm12, 4294967295, %v3671_v12  ;;  %v1716_v10 = vsel %vm3057_vm12, 1.0, %v3526_v45  ;;  %v1941_v31 = vld [vmem:[%s2306_s6 + $0xb8] sm:$0xff]  ;;  %vm3675_vm4 = vmmov %vm3670_vm3 }
 0x1b9   : > { %905 = vadd.xlane.f32.xlu1 %v1862_v42  ;;  %679 = vadd.xlane.f32.xlu0 %v618_v5  ;;  %v1490_v42 = vsel %vm3673_vm14, %v1447_v16, 0.0  ;;  %v1283_v5 = vadd.f32 %v1716_v10, %v1187_v35  ;;  %vm386_vm2 = vcmp.ge.s32.totalorder %v1941_v31, 0  ;;  %v1942_v16 = vld [vmem:[%s2149_s30 + $0xc0] sm:$0xff]  ;;  %vm3073_vm3 = vmand %vm385_vm8, %vm417_vm13  ;;  %vm418_vm12 = vcmp.lt.s32.totalorder %v1941_v31, 128 }
 0x1ba   : > { %v1491_v0 = vadd.f32 %v1490_v42, %v1489_v17  ;;  %v613_v29 = vsel %vm581_vm1, %v1942_v16, 0.0  ;;  %v3677_v49 = vsel %vm3073_vm3, 4294967295, %v3676_v49  ;;  %vm3678_vm14 = vmmov %vm3675_vm4  ;;  %v1450_v42 = vld [vmem:[#allocation3 + $0x78] sm:$0xff]  ;;  %vm420_vm13 = vcmp.lt.s32.totalorder %v1943_v43, 128 }
 0x1bb   : > { %1315 = vst.msk [vmem:[#allocation3 + $0xa8] sm:$0xff] %vm3675_vm4, %v1283_v5  ;;  %v1494_v17 = vsel %vm3678_vm14, %v1449_v55, 0.0  ;;  %vm3679_vm1 = vmmov %vm3675_vm4  ;;  %v1945_v55 = vld [vmem:[%s2149_s30 + $0xd0] sm:$0xff]  ;;  %vm585_vm4 = vcmp.eq.s32.totalorder %v2477_v51, %v3002_v26 }
 0x1bc   : > { %v1493_v22 = vadd.f32 %v1492_v4, %v1491_v0  ;;  %v1496_v10 = vsel %vm3679_vm1, %v1450_v42, 0.0  ;;  %v1451_v0 = vld [vmem:[#allocation3 + $0x80] sm:$0xff]  ;;  %vm3680_vm14 = vmmov %vm3679_vm1 }
 0x1bd   : > { %907 = vadd.xlane.f32.xlu1 %v1864_v25  ;;  %683 = vadd.xlane.f32.xlu0 %v620_v19  ;;  %v1188_v25 = vld [vmem:[#allocation3 + $0xb0] sm:$0xff]  ;;  %v1717_v19 = vsel %vm3073_vm3, 1.0, %v3526_v45  ;;  %v1944_v4 = vld [vmem:[%s2306_s6 + $0xc0] sm:$0xff]  ;;  %vm3093_vm3 = vmand %vm386_vm2, %vm418_vm12  ;;  %v1498_v16 = vsel %vm3679_vm1, %v1451_v0, 0.0 }
 0x1be   : > { %v1495_v14 = vadd.f32 %v1494_v17, %v1493_v22  ;;  %v1284_v35 = vadd.f32 %v1717_v19, %v1188_v25  ;;  %v3681_v22 = vmov 0  ;;  %v1189_v17 = vld [vmem:[#allocation3 + $0xb8] sm:$0xff]  ;;  %v1718_v61 = vsel %vm3093_vm3, 1.0, %v3526_v45  ;;  %v1452_v25 = vld [vmem:[#allocation3 + $0x88] sm:$0xff]  ;;  %v553_v19 = vpop.permute.xlu1 %552  ;;  %vm3683_vm12 = vmmov %vm3679_vm1 }
 0x1bf   : > { %v3682_v22 = vsel %vm3093_vm3, 4294967295, %v3681_v22  ;;  %v1285_v42 = vadd.f32 %v1718_v61, %v1189_v17  ;;  %v1453_v0 = vld [vmem:[#allocation3 + $0x90] sm:$0xff]  ;;  %v1948_v45 = vld [vmem:[%s2149_s30 + $0xe0] sm:$0xff]  ;;  %vm3687_vm3 = vmmov %vm3683_vm12  ;;  %vm3689_vm2 = vcmp.ge.s32.totalorder %v1944_v4, 0  ;;  %v3694_v61 = vmov 0.0  }
 0x1c0   : > { %v1497_v5 = vadd.f32 %v1496_v10, %v1495_v14  ;;  %1316 = vst.msk [vmem:[#allocation3 + $0xb0] sm:$0xff] %vm3680_vm14, %v1284_v35  ;;  %v1500_v14 = vsel %vm3683_vm12, %v1452_v25, 0.0  ;;  %v1946_v35 = vld [vmem:[%s2306_s6 + $0xd0] sm:$0xff]  ;;  %v3685_v10 = vmov 0  ;;  %vm3688_vm12 = vcmp.lt.s32.totalorder %v1944_v4, 128  ;;  %v1191_v17 = vld [vmem:[#allocation3 + $0xc8] sm:$0xff] }
 0x1c1   : > { %669 = vadd.xlane.f32.xlu1 %v613_v29  ;;  %v615_v29 = vsel %vm583_vm11, %v1945_v55, 0.0  ;;  %vm3684_vm11 = vcmp.ge.s32.totalorder %v1943_v43, 0  ;;  %1317 = vst.msk [vmem:[#allocation3 + $0xb8] sm:$0xff] %vm3687_vm3, %v1285_v42  ;;  %vm3119_vm6 = vmand %vm3689_vm2, %vm3688_vm12  ;;  %v3690_v43 = vmov 0  ;;  %v1454_v25 = vld [vmem:[#allocation3 + $0x98] sm:$0xff]  ;;  %v1455_v36 = vld [vmem:[#allocation3 + $0xa0] sm:$0xff] }
 0x1c2   : > { %v1499_v31 = vadd.f32 %v1498_v16, %v1497_v5  ;;  %vm3107_vm14 = vmand %vm3684_vm11, %vm420_vm13  ;;  %v617_v5 = vsel %vm585_vm4, %v1948_v45, 0.0  ;;  %v3691_v43 = vsel %vm3119_vm6, 4294967295, %v3690_v43  ;;  %vm587_vm11 = vcmp.eq.s32.totalorder %v2477_v51, %v553_v19  ;;  %v1190_v45 = vld [vmem:[#allocation3 + $0xc0] sm:$0xff] }
 0x1c3   : > { %v3686_v10 = vsel %vm3107_vm14, 4294967295, %v3685_v10  ;;  %3692 = vst [vmem:[#allocation10_spill] sm:$0xff] %v3691_v43  ;;  %vm3693_vm13 = vmmov %vm3687_vm3  ;;  %v1720_v26 = vsel %vm3107_vm14, 1.0, %v3694_v61  ;;  %v1719_v4 = vsel %vm3119_vm6, 1.0, %v3694_v61  ;;  %v619_v59 = vsel %vm587_vm11, %v2938_v11, 0.0 }
 0x1c4   : > { %v1501_v55 = vadd.f32 %v1500_v14, %v1499_v31  ;;  %v1502_v16 = vsel %vm3693_vm13, %v1453_v0, 0.0  ;;  %v1287_v42 = vadd.f32 %v1720_v26, %v1191_v17  ;;  %v1286_v14 = vadd.f32 %v1719_v4, %v1190_v45  ;;  %vm3695_vm4 = vmmov %vm3687_vm3  ;;  %v3700_v17 = vld [vmem:[#allocation45_spill] sm:$0xff]  ;;  %v1192_v45 = vld [vmem:[#allocation3 + $0xd0] sm:$0xff] }
 0x1c5   : > { %673 = vadd.xlane.f32.xlu1 %v615_v29  ;;  %v1947_v29 = vld [vmem:[%s2306_s6 + $0xd8] sm:$0xff]  ;;  %v1504_v0 = vsel %vm3695_vm4, %v1454_v25, 0.0  ;;  %vm3696_vm12 = vmmov %vm3687_vm3  ;;  %vm423_vm6 = vcmp.lt.s32.totalorder %v1949_v3, 128  ;;  %1865 = vlog2.f32 %v3700_v17  ;;  %vm3701_vm11 = vcmp.lt.s32.totalorder %v1946_v35, 128  ;;  %v1456_v4 = vld [vmem:[#allocation3 + $0xa8] sm:$0xff] }
 0x1c6   : > { %vm390_vm1 = vcmp.ge.s32.totalorder %v1947_v29, 0  ;;  %vm422_vm8 = vcmp.lt.s32.totalorder %v1947_v29, 128  ;;  %v1503_v31 = vadd.f32 %v1502_v16, %v1501_v55  ;;  %1319 = vst.msk [vmem:[#allocation3 + $0xc8] sm:$0xff] %vm3696_vm12, %v1287_v42  ;;  %v3697_v55 = vmov 0  ;;  %vm3699_vm4 = vmmov %vm3687_vm3  ;;  %v1193_v26 = vld [vmem:[#allocation3 + $0xd8] sm:$0xff]  ;;  %v1950_v29 = vld [vmem:[%s2306_s6 + $0xe8] sm:$0xff] }
 0x1c7   : > { %vm3139_vm13 = vmand %vm390_vm1, %vm422_vm8  ;;  %1318 = vst.msk [vmem:[#allocation3 + $0xc0] sm:$0xff] %vm3687_vm3, %v1286_v14  ;;  %v1506_v16 = vsel %vm3699_vm4, %v1455_v36, 0.0  ;;  %vm3702_vm12 = vcmp.ge.s32.totalorder %v1946_v35, 0  ;;  %v3703_v11 = vmov 0  ;;  %v1508_v35 = vsel %vm3687_vm3, %v1456_v4, 0.0 }
 0x1c8   : > { %v3698_v55 = vsel %vm3139_vm13, 4294967295, %v3697_v55  ;;  %v1722_v51 = vsel %vm3139_vm13, 1.0, %v3694_v61  ;;  %vm3151_vm2 = vmand %vm3702_vm12, %vm3701_vm11  ;;  %vm3707_vm11 = vcmp.ge.s32.totalorder %v1949_v3, 0  ;;  %v3708_v42 = vmov 0 }
 0x1c9   : > { %677 = vadd.xlane.f32.xlu1 %v617_v5  ;;  %v1505_v5 = vadd.f32 %v1504_v0, %v1503_v31  ;;  %v3704_v11 = vsel %vm3151_vm2, 4294967295, %v3703_v11  ;;  %v1289_v36 = vadd.f32 %v1722_v51, %v1193_v26  ;;  %v1457_v31 = vld [vmem:[#allocation3 + $0xb0] sm:$0xff]  ;;  %vm3706_vm4 = vmmov %vm3687_vm3  ;;  %vm3713_vm13 = vcmp.lt.s32.totalorder %v1950_v29, 128  ;;  %v1195_v26 = vld [vmem:[#allocation3 + $0xe8] sm:$0xff] }
 0x1ca   : > { %3705 = vst [vmem:[#allocation22_spill] sm:$0xff] %v3704_v11  ;;  %vm3163_vm12 = vmand %vm3707_vm11, %vm423_vm6  ;;  %vm3714_vm14 = vcmp.ge.s32.totalorder %v1950_v29, 0  ;;  %v3715_v17 = vmov 0  ;;  %v1952_v51 = vld [vmem:[%s2306_s6 + $0xf8] sm:$0xff] }
 0x1cb   : > { %v1507_v19 = vadd.f32 %v1506_v16, %v1505_v5  ;;  %1321 = vst.msk [vmem:[#allocation3 + $0xd8] sm:$0xff] %vm3706_vm4, %v1289_v36  ;;  %v3709_v42 = vsel %vm3163_vm12, 4294967295, %v3708_v42  ;;  %vm3711_vm8 = vmmov %vm3687_vm3  ;;  %v1951_v5 = vld [vmem:[%s2306_s6 + $0xf0] sm:$0xff]  ;;  %v1723_v3 = vsel %vm3163_vm12, 1.0, %v3694_v61  ;;  %vm394_vm6 = vcmp.ge.s32.totalorder %v1952_v51, 0  ;;  %v1194_v36 = vld [vmem:[#allocation3 + $0xe0] sm:$0xff] }
 0x1cc   : > { %3710 = vst [vmem:[#allocation12_spill] sm:$0xff] %v3709_v42  ;;  %v1510_v0 = vsel %vm3711_vm8, %v1457_v31, 0.0  ;;  %vm393_vm1 = vcmp.ge.s32.totalorder %v1951_v5, 0  ;;  %v3712_v16 = vld [vmem:[#allocation44_spill] sm:$0xff]  ;;  %vm3172_vm5 = vmand %vm3714_vm14, %vm3713_vm13  ;;  %vm426_vm14 = vcmp.lt.s32.totalorder %v1952_v51, 128  ;;  %v1290_v4 = vadd.f32 %v1723_v3, %v1194_v36  ;;  %s2063_s6 = smov [#allocation4]  }
 0x1cd   : > { %681 = vadd.xlane.f32.xlu1 %v619_v59  ;;  %v1721_v59 = vsel %vm3151_vm2, 1.0, %v3694_v61  ;;  %v1509_v14 = vadd.f32 %v1508_v35, %v1507_v19  ;;  %vm425_vm2 = vcmp.lt.s32.totalorder %v1951_v5, 128  ;;  %1867 = vlog2.f32 %v3712_v16  ;;  %vm3718_vm13 = vmmov %vm3687_vm3  ;;  %s1957_s8 = sshll.u32 %s2063_s6, 4  ;;  %s1958_s8 = int_to_ptr.vmem [resolvable:$false] %s1957_s8 }
 0x1ce   : > { %v1288_v25 = vadd.f32 %v1721_v59, %v1192_v45  ;;  %v3716_v17 = vsel %vm3172_vm5, 4294967295, %v3715_v17  ;;  %v1724_v19 = vsel %vm3172_vm5, 1.0, %v3694_v61  ;;  %v1458_v45 = vld [vmem:[#allocation3 + $0xb8] sm:$0xff]  ;;  %v1459_v31 = vld [vmem:[#allocation3 + $0xc0] sm:$0xff]  ;;  %vm3187_vm8 = vmand %vm393_vm1, %vm425_vm2  ;;  %1869 = vlog2.f32 %v2469_v28  ;;  %1322 = vst.msk [vmem:[#allocation3 + $0xe0] sm:$0xff] %vm3687_vm3, %v1290_v4  ;;  %s1959_s21 = scalar_lea.vmem %s1958_s8, 256  ;;  %p1960_p1 = scmp.lt.s32.totalorder %s3391_s18, %s1958_s8 }
 0x1cf   : > { %3717 = vst [vmem:[#allocation23_spill] sm:$0xff] %v3716_v17  ;;  %v1511_v29 = vadd.f32 %v1510_v0, %v1509_v14  ;;  %v1291_v59 = vadd.f32 %v1724_v19, %v1195_v26  ;;  %v1512_v35 = vsel %vm3718_vm13, %v1458_v45, 0.0  ;;  %vm3722_vm4 = vmmov %vm3687_vm3  ;;  %v1196_v14 = vld [vmem:[#allocation3 + $0xf0] sm:$0xff]  ;;  %v1725_v0 = vsel %vm3187_vm8, 1.0, %v3694_v61  ;;  %v1460_v26 = vld [vmem:[#allocation3 + $0xc8] sm:$0xff]  ;;  %p1961_p2 = scmp.lt.s32.totalorder %s1959_s21, %s1953_s5 }
 0x1d0   : > { %1320 = vst.msk [vmem:[#allocation3 + $0xd0] sm:$0xff] %vm3687_vm3, %v1288_v25  ;;  %v3719_v25 = vmov 0  ;;  %v1514_v42 = vsel %vm3722_vm4, %v1459_v31, 0.0  ;;  %vm3723_vm11 = vmmov %vm3687_vm3  ;;  %v3724_v5 = vmov 0  ;;  %v1292_v3 = vadd.f32 %v1725_v0, %v1196_v14  ;;  %v1197_v28 = vld [vmem:[#allocation3 + $0xf8] sm:$0xff] }
 0x1d1   : > { %v3720_v25 = vsel %vm3187_vm8, 4294967295, %v3719_v25  ;;  %v1513_v16 = vadd.f32 %v1512_v35, %v1511_v29  ;;  %1323 = vst.msk [vmem:[#allocation3 + $0xe8] sm:$0xff] %vm3723_vm11, %v1291_v59  ;;  %vm3199_vm2 = vmand %vm394_vm6, %vm426_vm14  ;;  %v3728_v29 = vld [vmem:[#allocation46_spill] sm:$0xff]  ;;  %p1962_p3 = por %p1961_p2, %p1960_p1 }
 0x1d2   : > { %3721 = vst [vmem:[#allocation39_spill] sm:$0xff] %v3720_v25  ;;  %v3725_v5 = vsel %vm3199_vm2, 4294967295, %v3724_v5  ;;  %vm3727_vm1 = vmmov %vm3687_vm3  ;;  %v1726_v45 = vsel %vm3199_vm2, 1.0, %v3694_v61  ;;  %1871 = vlog2.f32 %v3728_v29  ;;  %v1462_v35 = vld [vmem:[#allocation3 + $0xd8] sm:$0xff] }
 0x1d3   : > { %3726 = vst [vmem:[#allocation11_spill] sm:$0xff] %v3725_v5  ;;  %v1515_v19 = vadd.f32 %v1514_v42, %v1513_v16  ;;  %v1516_v36 = vsel %vm3727_vm1, %v1460_v26, 0.0  ;;  %v1293_v4 = vadd.f32 %v1726_v45, %v1197_v28  ;;  %vm3729_vm13 = vmmov %vm3727_vm1  ;;  %1873 = vlog2.f32 %v2475_v47  ;;  %v1866_v16 = vpop.eup %1865  ;;  %v3735_v5 = vld [vmem:[#allocation47_spill] sm:$0xff]  ;;  %p1963_p5 = pnand %p1962_p3, %p1956_p0 }
 0x1d4   : > { %v860_v59 = vpop.xlane.xlu1 %859  ;;  %1324 = vst.msk [vmem:[#allocation3 + $0xf0] sm:$0xff] %vm3729_vm13, %v1292_v3  ;;  %vm3730_vm6 = vmmov %vm3727_vm1  ;;  %v910_v29 = vmul.f32 0.6931472, %v1866_v16  ;;  %1875 = vlog2.f32 %v2471_v24 }
 0x1d5   : > { %v1517_v31 = vadd.f32 %v1516_v36, %v1515_v19  ;;  %vm3731_vm14 = vmmov %vm3727_vm1  ;;  %v1463_v61 = vld [vmem:[#allocation3 + $0xe0] sm:$0xff]  ;;  %1877 = vlog2.f32 %v3735_v5 }
 0x1d6   : > { %1325 = vst.msk [vmem:[#allocation3 + $0xf8] sm:$0xff] %vm3731_vm14, %v1293_v4  ;;  %vm3732_vm4 = vmmov %vm3727_vm1  ;;  %1879 = vlog2.f32 %v860_v59 }
 0x1d7   : > { %v1461_v51 = vld [vmem:[#allocation3 + $0xd0] sm:$0xff]  ;;  %v1520_v0 = vsel %vm3732_vm4, %v1462_v35, 0.0  ;;  %vm3733_vm11 = vmmov %vm3727_vm1  ;;  %vm3752_vm4 = vnez %v3595_v9 }
 0x1d8   : > { %v1518_v42 = vsel %vm3730_vm6, %v1461_v51, 0.0  ;;  %v1464_v28 = vld [vmem:[#allocation3 + $0xe8] sm:$0xff]  ;;  %v1522_v3 = vsel %vm3733_vm11, %v1463_v61, 0.0  ;;  %v864_v36 = vpop.xlane.xlu1 %863  ;;  %vm3734_vm3 = vmmov %vm3727_vm1  ;;  %v3736_v35 = vld [vmem:[#allocation16_spill] sm:$0xff]  ;;  %vm3753_vm11 = vnez %v3597_v23 }
 0x1d9   : > { %v1519_v14 = vadd.f32 %v1518_v42, %v1517_v31  ;;  %v1524_v45 = vsel %vm3734_vm3, %v1464_v28, 0.0  ;;  %v973_v42 = vadd.f32 %v910_v29, %v3736_v35  ;;  %vm3737_vm13 = vmmov %vm3727_vm1  ;;  %v1070_v35 = vld [vmem:[#allocation2 + $0x8] sm:$0xff]  ;;  %v3758_v23 = vld [vmem:[#allocation29_spill] sm:$0xff] }
 0x1da   : > { %v1868_v19 = vpop.eup %1867  ;;  %vm3739_vm6 = vmmov %vm3727_vm1 }
 0x1db   : > { %v1521_v26 = vadd.f32 %v1520_v0, %v1519_v14  ;;  %v1465_v51 = vld [vmem:[#allocation3 + $0xf0] sm:$0xff]  ;;  %v912_v16 = vmul.f32 0.6931472, %v1868_v19  ;;  %v1870_v24 = vpop.eup %1869  ;;  %v862_v0 = vpop.xlane.xlu0 %861  ;;  %vm3747_vm14 = vmmov %vm3727_vm1 }
 0x1dc   : > { %v1526_v31 = vsel %vm3727_vm1, %v1465_v51, 0.0  ;;  %1881 = vlog2.f32 %v862_v0  ;;  %v1073_v0 = vld [vmem:[#allocation2 + $0x20] sm:$0xff] }
 0x1dd   : > { %v1523_v47 = vadd.f32 %v1522_v3, %v1521_v26  ;;  %v1466_v14 = vld [vmem:[#allocation3 + $0xf8] sm:$0xff]  ;;  %v1069_v26 = vld [vmem:[#allocation2] sm:$0xff]  ;;  %1883 = vlog2.f32 %v864_v36 }
 0x1de   : > { %v1528_v17 = vsel %vm3737_vm13, %v1466_v14, 0.0  ;;  %vm3757_vm13 = vnez %v3599_v40 }
 0x1df   : > { %v1525_v4 = vadd.f32 %v1524_v45, %v1523_v47  ;;  %v1872_v11 = vpop.eup %1871  ;;  %v3738_v47 = vld [vmem:[#allocation18_spill] sm:$0xff]  ;;  %v918_v45 = vmul.f32 0.6931472, %v1870_v24 }
 0x1e0   : > { %v974_v59 = vadd.f32 %v912_v16, %v3738_v47  ;;  %v1874_v29 = vpop.eup %1873 }
 0x1e1   : > { %v1527_v61 = vadd.f32 %v1526_v31, %v1525_v4  ;;  %v914_v4 = vmul.f32 0.6931472, %v1872_v11  ;;  %v920_v62 = vmul.f32 0.6931472, %v1874_v29  ;;  %v1071_v29 = vld [vmem:[#allocation2 + $0x10] sm:$0xff] }
 0x1e2   : > { %v622_v25 = vpop.xlane.xlu1 %621 }
 0x1e3   : > { %v1005_v3 = vsub.f32 %v973_v42, %v622_v25  ;;  %v1529_v28 = vadd.f32 %v1528_v17, %v1527_v61  ;;  %v3740_v25 = vld [vmem:[#allocation19_spill] sm:$0xff]  ;;  %v1876_v42 = vpop.eup %1875 }
 0x1e4   : > { %v977_v31 = vadd.f32 %v918_v45, %v3740_v25 }
 0x1e5   : > { %v1037_v5 = vsel %vm2646_vm9, %v1005_v3, 0.0  ;;  %1530 = vadd.xlane.f32.xlu0 %v1529_v28  ;;  %vm3741_vm9 = vmmov %vm3727_vm1  ;;  %v1878_v28 = vpop.eup %1877 }
 0x1e6   : > { %v1101_v19 = vadd.f32 %v1069_v26, %v1037_v5  ;;  %v624_v51 = vpop.xlane.xlu1 %623  ;;  %v3742_v26 = vld [vmem:[#allocation15_spill] sm:$0xff]  ;;  %v922_v5 = vmul.f32 0.6931472, %v1876_v42  ;;  %v1880_v36 = vpop.eup %1879 }
 0x1e7   : > { %v1006_v43 = vsub.f32 %v974_v59, %v624_v51  ;;  %v975_v3 = vadd.f32 %v914_v4, %v3742_v26  ;;  %v1074_v51 = vld [vmem:[#allocation2 + $0x28] sm:$0xff]  ;;  %v924_v4 = vmul.f32 0.6931472, %v1880_v36 }
 0x1e8   : > { %1134 = vst.msk [vmem:[#allocation2] sm:$0xff] %vm3739_vm6, %v1101_v19 }
 0x1e9   : > { %v1038_v17 = vsel %vm2673_vm15, %v1006_v43, 0.0  ;;  %v3743_v43 = vld [vmem:[#allocation20_spill] sm:$0xff]  ;;  %vm3744_vm15 = vmmov %vm3727_vm1  ;;  %v1882_v42 = vpop.eup %1881 }
 0x1ea   : > { %v1102_v14 = vadd.f32 %v1070_v35, %v1038_v17  ;;  %v866_v16 = vpop.xlane.xlu1 %865  ;;  %v630_v24 = vpop.xlane.xlu0 %629  ;;  %v978_v11 = vadd.f32 %v920_v62, %v3743_v43  ;;  %v916_v17 = vmul.f32 0.6931472, %v1878_v28 }
 0x1eb   : > { %v1009_v61 = vsub.f32 %v977_v31, %v630_v24  ;;  %1885 = vlog2.f32 %v866_v16  ;;  %v3745_v31 = vld [vmem:[#allocation21_spill] sm:$0xff]  ;;  %v1884_v43 = vpop.eup %1883 }
 0x1ec   : > { %1135 = vst.msk [vmem:[#allocation2 + $0x8] sm:$0xff] %vm3741_vm9, %v1102_v14  ;;  %v979_v62 = vadd.f32 %v922_v5, %v3745_v31  ;;  %v976_v28 = vadd.f32 %v916_v17, %v3749_v20  ;;  %v3754_v17 = vld [vmem:[#allocation31_spill] sm:$0xff]  ;;  %vm3760_vm9 = vnez %v3602_v21  ;;  %v1080_v21 = vld [vmem:[#allocation2 + $0x58] sm:$0xff] }
 0x1ed   : > { %v1041_v41 = vsel %vm2697_vm7, %v1009_v61, 0.0  ;;  %v1075_v61 = vld [vmem:[#allocation2 + $0x30] sm:$0xff]  ;;  %vm3746_vm7 = vmmov %vm3727_vm1 }
 0x1ee   : > { %v1105_v47 = vadd.f32 %v1073_v0, %v1041_v41  ;;  %v626_v59 = vpop.xlane.xlu1 %625  ;;  %v632_v45 = vpop.xlane.xlu0 %631  ;;  %v3750_v41 = vld [vmem:[#allocation27_spill] sm:$0xff] }
 0x1ef   : > { %v1007_v19 = vsub.f32 %v975_v3, %v626_v59  ;;  %v1010_v35 = vsub.f32 %v978_v11, %v632_v45  ;;  %v926_v3 = vmul.f32 0.6931472, %v1882_v42  ;;  %v980_v5 = vadd.f32 %v924_v4, %v3750_v41  ;;  %v1072_v59 = vld [vmem:[#allocation2 + $0x18] sm:$0xff] }
 0x1f0   : > { %1138 = vst.msk [vmem:[#allocation2 + $0x20] sm:$0xff] %vm3744_vm15, %v1105_v47 }
 0x1f1   : > { %v1039_v25 = vsel %vm2703_vm10, %v1007_v19, 0.0  ;;  %v1042_v58 = vsel %vm2732_vm0, %v1010_v35, 0.0  ;;  %vm3748_vm10 = vnez %v3593_v27  ;;  %vm3751_vm0 = vmmov %vm3727_vm1 }
 0x1f2   : > { %v1103_v14 = vadd.f32 %v1071_v29, %v1039_v25  ;;  %v1106_v16 = vadd.f32 %v1074_v51, %v1042_v58  ;;  %v868_v24 = vpop.xlane.xlu1 %867  ;;  %v634_v0 = vpop.xlane.xlu0 %633  ;;  %v1076_v29 = vld [vmem:[#allocation2 + $0x38] sm:$0xff]  ;;  %v928_v51 = vmul.f32 0.6931472, %v1884_v43  ;;  %v981_v25 = vadd.f32 %v926_v3, %v3754_v17  ;;  %vm3755_vm3 = vmmov %vm3751_vm0  ;;  %v3761_v43 = vld [vmem:[#allocation34_spill] sm:$0xff] }
 0x1f3   : > { %1887 = vlog2.f32 %v868_v24  ;;  %v1011_v26 = vsub.f32 %v979_v62, %v634_v0  ;;  %vm3756_vm1 = vmmov %vm3751_vm0 }
 0x1f4   : > { %1136 = vst.msk [vmem:[#allocation2 + $0x10] sm:$0xff] %vm3746_vm7, %v1103_v14  ;;  %v1077_v14 = vld [vmem:[#allocation2 + $0x40] sm:$0xff]  ;;  %v982_v0 = vadd.f32 %v928_v51, %v3758_v23  ;;  %vm3759_vm6 = vmmov %vm3751_vm0  ;;  %vm3763_vm7 = vnez %v3608_v7 }
 0x1f5   : > { %1139 = vst.msk [vmem:[#allocation2 + $0x28] sm:$0xff] %vm3747_vm14, %v1106_v16  ;;  %v1043_v32 = vsel %vm3748_vm10, %v1011_v26, 0.0  ;;  %vm3762_vm15 = vmmov %vm3751_vm0  ;;  %vm3766_vm10 = vnez %v3616_v8 }
 0x1f6   : > { %v1107_v11 = vadd.f32 %v1075_v61, %v1043_v32  ;;  %v628_v36 = vpop.xlane.xlu1 %627  ;;  %v636_v47 = vpop.xlane.xlu0 %635  ;;  %v1078_v32 = vld [vmem:[#allocation2 + $0x48] sm:$0xff]  ;;  %vm3765_vm14 = vmmov %vm3751_vm0 }
 0x1f7   : > { %v1008_v45 = vsub.f32 %v976_v28, %v628_v36  ;;  %v1012_v19 = vsub.f32 %v980_v5, %v636_v47 }
 0x1f8   : > { %1140 = vst.msk [vmem:[#allocation2 + $0x30] sm:$0xff] %vm3751_vm0, %v1107_v11  ;;  %v1886_v4 = vpop.eup %1885 }
 0x1f9   : > { %v1040_v35 = vsel %vm3752_vm4, %v1008_v45, 0.0  ;;  %v1044_v27 = vsel %vm3753_vm11, %v1012_v19, 0.0  ;;  %v930_v24 = vmul.f32 0.6931472, %v1886_v4  ;;  %v3764_v19 = vld [vmem:[#allocation33_spill] sm:$0xff]  ;;  %vm3767_vm4 = vnez %v3623_v39  ;;  %vm3768_vm11 = vmmov %vm3751_vm0 }
 0x1fa   : > { %v1104_v58 = vadd.f32 %v1072_v59, %v1040_v35  ;;  %v1108_v31 = vadd.f32 %v1076_v29, %v1044_v27  ;;  %v870_v62 = vpop.xlane.xlu1 %869  ;;  %v638_v42 = vpop.xlane.xlu0 %637  ;;  %v1079_v59 = vld [vmem:[#allocation2 + $0x50] sm:$0xff] }
 0x1fb   : > { %1889 = vlog2.f32 %v870_v62  ;;  %v1013_v16 = vsub.f32 %v981_v25, %v638_v42  ;;  %v983_v11 = vadd.f32 %v930_v24, %v3761_v43 }
 0x1fc   : > { %1137 = vst.msk [vmem:[#allocation2 + $0x18] sm:$0xff] %vm3755_vm3, %v1104_v58  ;;  %vm3769_vm3 = vnez %v3630_v63 }
 0x1fd   : > { %1141 = vst.msk [vmem:[#allocation2 + $0x38] sm:$0xff] %vm3756_vm1, %v1108_v31  ;;  %v1045_v9 = vsel %vm3757_vm13, %v1013_v16, 0.0  ;;  %vm3770_vm1 = vmmov %vm3751_vm0 }
 0x1fe   : > { %v1109_v61 = vadd.f32 %v1077_v14, %v1045_v9  ;;  %v872_v26 = vpop.xlane.xlu1 %871  ;;  %v640_v3 = vpop.xlane.xlu0 %639  ;;  %v1081_v9 = vld [vmem:[#allocation2 + $0x60] sm:$0xff]  ;;  %vm3771_vm13 = vmmov %vm3751_vm0 }
 0x1ff   : > { %1891 = vlog2.f32 %v872_v26  ;;  %v1014_v20 = vsub.f32 %v982_v0, %v640_v3 }
 0x200   : > { %v1888_v28 = vpop.eup %1887  ;;  %1142 = vst.msk [vmem:[#allocation2 + $0x40] sm:$0xff] %vm3759_vm6, %v1109_v61  ;;  %vm3772_vm6 = vnez %v3637_v2 }
 0x201   : > { %v932_v41 = vmul.f32 0.6931472, %v1888_v28  ;;  %v1046_v5 = vsel %vm3760_vm9, %v1014_v20, 0.0  ;;  %v1082_v28 = vld [vmem:[#allocation2 + $0x68] sm:$0xff]  ;;  %vm3773_vm9 = vmmov %vm3751_vm0 }
 0x202   : > { %v1110_v36 = vadd.f32 %v1078_v32, %v1046_v5  ;;  %v874_v40 = vpop.xlane.xlu1 %873  ;;  %v642_v47 = vpop.xlane.xlu0 %641 }
 0x203   : > { %1893 = vlog2.f32 %v874_v40  ;;  %v1015_v45 = vsub.f32 %v983_v11, %v642_v47  ;;  %v984_v51 = vadd.f32 %v932_v41, %v3764_v19 }
 0x204   : > { %1143 = vst.msk [vmem:[#allocation2 + $0x48] sm:$0xff] %vm3762_vm15, %v1110_v36  ;;  %v1330_v36 = vld [vmem:[#allocation2 + $0x8] sm:$0xff]  ;;  %vm3774_vm15 = vmmov %vm3751_vm0 }
 0x205   : > { %v1047_v29 = vsel %vm3763_vm7, %v1015_v45, 0.0  ;;  %v1329_v45 = vld [vmem:[#allocation2] sm:$0xff]  ;;  %vm3775_vm7 = vmmov %vm3751_vm0 }
 0x206   : > { %v1111_v35 = vadd.f32 %v1079_v59, %v1047_v29  ;;  %v876_v27 = vpop.xlane.xlu1 %875  ;;  %v644_v17 = vpop.xlane.xlu0 %643  ;;  %v1331_v29 = vld [vmem:[#allocation2 + $0x10] sm:$0xff] }
 0x207   : > { %1895 = vlog2.f32 %v876_v27  ;;  %v1016_v25 = vsub.f32 %v984_v51, %v644_v17  ;;  %v1332_v17 = vld [vmem:[#allocation2 + $0x18] sm:$0xff] }
 0x208   : > { %v1890_v4 = vpop.eup %1889  ;;  %1144 = vst.msk [vmem:[#allocation2 + $0x50] sm:$0xff] %vm3765_vm14, %v1111_v35  ;;  %v1362_v35 = vsel %vm3771_vm13, %v1330_v36, 0.0  ;;  %vm3776_vm14 = vmmov %vm3751_vm0 }
 0x209   : > { %v934_v58 = vmul.f32 0.6931472, %v1890_v4  ;;  %v1048_v31 = vsel %vm3766_vm10, %v1016_v25, 0.0  ;;  %v1361_v25 = vsel %vm3773_vm9, %v1329_v45, 0.0  ;;  %v1364_v4 = vsel %vm3774_vm15, %v1331_v29, 0.0  ;;  %vm3782_vm13 = vmmov %vm3751_vm0 }
 0x20a   : > { %v1112_v62 = vadd.f32 %v1080_v21, %v1048_v31  ;;  %v878_v42 = vpop.xlane.xlu1 %877  ;;  %v646_v14 = vpop.xlane.xlu0 %645  ;;  %v1084_v31 = vld [vmem:[#allocation2 + $0x78] sm:$0xff]  ;;  %v1366_v2 = vsel %vm3776_vm14, %v1332_v17, 0.0  ;;  %vm3777_vm10 = vnez %v3643_v15  ;;  %vm3784_vm9 = vnez %v3659_v52  ;;  %vm3785_vm15 = vmmov %vm3751_vm0 }
 0x20b   : > { %1897 = vlog2.f32 %v878_v42  ;;  %v985_v7 = vadd.f32 %v934_v58, %v2408_v57  ;;  %v1363_v42 = vadd.f32 %v1362_v35, %v1361_v25  ;;  %v1335_v35 = vld [vmem:[#allocation2 + $0x30] sm:$0xff]  ;;  %vm3787_vm14 = vnez %v3664_v18 }
 0x20c   : > { %v1892_v16 = vpop.eup %1891  ;;  %1145 = vst.msk [vmem:[#allocation2 + $0x58] sm:$0xff] %vm3751_vm0, %v1112_v62  ;;  %v1372_v25 = vsel %vm3785_vm15, %v1335_v35, 0.0  ;;  %vm3796_vm15 = vmmov %vm3751_vm0  ;;  %v1092_v35 = vld [vmem:[#allocation2 + $0xb8] sm:$0xff] }
 0x20d   : > { %v936_v24 = vmul.f32 0.6931472, %v1892_v16  ;;  %v1017_v23 = vsub.f32 %v985_v7, %v646_v14 }
 0x20e   : > { %v880_v0 = vpop.xlane.xlu1 %879  ;;  %v648_v61 = vpop.xlane.xlu0 %647 }
 0x20f   : > { %v1049_v26 = vsel %vm3767_vm4, %v1017_v23, 0.0  ;;  %1899 = vlog2.f32 %v880_v0  ;;  %v986_v8 = vadd.f32 %v936_v24, %v2403_v37  ;;  %v1083_v37 = vld [vmem:[#allocation2 + $0x70] sm:$0xff]  ;;  %vm3778_vm4 = vnez %v3649_v46 }
 0x210   : > { %v1894_v3 = vpop.eup %1893  ;;  %v1113_v32 = vadd.f32 %v1081_v9, %v1049_v26  ;;  %v1365_v9 = vadd.f32 %v1364_v4, %v1363_v42  ;;  %v1336_v42 = vld [vmem:[#allocation2 + $0x38] sm:$0xff] }
 0x211   : > { %v938_v20 = vmul.f32 0.6931472, %v1894_v3  ;;  %v1018_v41 = vsub.f32 %v986_v8, %v648_v61  ;;  %v1085_v61 = vld [vmem:[#allocation2 + $0x80] sm:$0xff] }
 0x212   : > { %1146 = vst.msk [vmem:[#allocation2 + $0x60] sm:$0xff] %vm3768_vm11, %v1113_v32  ;;  %v882_v57 = vpop.xlane.xlu1 %881  ;;  %v650_v5 = vpop.xlane.xlu0 %649  ;;  %v1333_v8 = vld [vmem:[#allocation2 + $0x20] sm:$0xff]  ;;  %v1367_v3 = vadd.f32 %v1366_v2, %v1365_v9  ;;  %vm3779_vm11 = vmmov %vm3751_vm0 }
 0x213   : > { %v1050_v43 = vsel %vm3769_vm3, %v1018_v41, 0.0  ;;  %1901 = vlog2.f32 %v882_v57  ;;  %v987_v11 = vadd.f32 %v938_v20, %v2416_v38  ;;  %v1368_v57 = vsel %vm3779_vm11, %v1333_v8, 0.0  ;;  %vm3780_vm3 = vmmov %vm3751_vm0  ;;  %v1089_v9 = vld [vmem:[#allocation2 + $0xa0] sm:$0xff] }
 0x214   : > { %v1896_v39 = vpop.eup %1895  ;;  %v1114_v40 = vadd.f32 %v1082_v28, %v1050_v43  ;;  %v1086_v43 = vld [vmem:[#allocation2 + $0x88] sm:$0xff]  ;;  %v1369_v36 = vadd.f32 %v1368_v57, %v1367_v3  ;;  %vm3790_vm11 = vmmov %vm3751_vm0 }
 0x215   : > { %v940_v47 = vmul.f32 0.6931472, %v1896_v39  ;;  %v1019_v59 = vsub.f32 %v987_v11, %v650_v5  ;;  %v1334_v39 = vld [vmem:[#allocation2 + $0x28] sm:$0xff] }
 0x216   : > { %1147 = vst.msk [vmem:[#allocation2 + $0x68] sm:$0xff] %vm3770_vm1, %v1114_v40  ;;  %v884_v19 = vpop.xlane.xlu1 %883  ;;  %v652_v51 = vpop.xlane.xlu0 %651  ;;  %vm3781_vm1 = vnez %v3654_v13  ;;  %v1370_v45 = vsel %vm3782_vm13, %v1334_v39, 0.0  ;;  %v1338_v57 = vld [vmem:[#allocation2 + $0x48] sm:$0xff]  ;;  %vm3793_vm13 = vmmov %vm3751_vm0 }
 0x217   : > { %v1051_v63 = vsel %vm3772_vm6, %v1019_v59, 0.0  ;;  %1903 = vlog2.f32 %v884_v19  ;;  %v988_v38 = vadd.f32 %v940_v47, %v2414_v60  ;;  %v1087_v19 = vld [vmem:[#allocation2 + $0x90] sm:$0xff]  ;;  %vm3783_vm6 = vmmov %vm3751_vm0 }
 0x218   : > { %v1898_v27 = vpop.eup %1897  ;;  %v1115_v21 = vadd.f32 %v1083_v37, %v1051_v63  ;;  %v1371_v63 = vadd.f32 %v1370_v45, %v1369_v36  ;;  %v1378_v36 = vsel %vm3793_vm13, %v1338_v57, 0.0  ;;  %vm3804_vm13 = vmmov %vm3751_vm0 }
 0x219   : > { %v942_v58 = vmul.f32 0.6931472, %v1898_v27  ;;  %v1020_v62 = vsub.f32 %v988_v38, %v652_v51 }
 0x21a   : > { %1148 = vst.msk [vmem:[#allocation2 + $0x70] sm:$0xff] %vm3775_vm7, %v1115_v21  ;;  %v886_v14 = vpop.xlane.xlu1 %885  ;;  %v654_v7 = vpop.xlane.xlu0 %653  ;;  %vm3786_vm7 = vmmov %vm3751_vm0 }
 0x21b   : > { %v1052_v60 = vsel %vm3777_vm10, %v1020_v62, 0.0  ;;  %1905 = vlog2.f32 %v886_v14  ;;  %v989_v16 = vadd.f32 %v942_v58, %v2422_v56  ;;  %v1088_v58 = vld [vmem:[#allocation2 + $0x98] sm:$0xff]  ;;  %v1373_v62 = vadd.f32 %v1372_v25, %v1371_v63  ;;  %vm3788_vm10 = vmmov %vm3751_vm0 }
 0x21c   : > { %v1900_v24 = vpop.eup %1899  ;;  %v1116_v23 = vadd.f32 %v1084_v31, %v1052_v60 }
 0x21d   : > { %v944_v0 = vmul.f32 0.6931472, %v1900_v24  ;;  %v1021_v26 = vsub.f32 %v989_v16, %v654_v7  ;;  %v1374_v16 = vsel %vm3788_vm10, %v1336_v42, 0.0  ;;  %vm3799_vm10 = vnez %v3682_v22 }
 0x21e   : > { %1149 = vst.msk [vmem:[#allocation2 + $0x78] sm:$0xff] %vm3751_vm0, %v1116_v23  ;;  %v888_v32 = vpop.xlane.xlu1 %887  ;;  %v656_v20 = vpop.xlane.xlu0 %655 }
 0x21f   : > { %v1053_v28 = vsel %vm3778_vm4, %v1021_v26, 0.0  ;;  %1907 = vlog2.f32 %v888_v32  ;;  %v990_v15 = vadd.f32 %v944_v0, %v2419_v54  ;;  %v1375_v0 = vadd.f32 %v1374_v16, %v1373_v62 }
 0x220   : > { %v1902_v41 = vpop.eup %1901  ;;  %v1117_v56 = vadd.f32 %v1085_v61, %v1053_v28  ;;  %v1337_v61 = vld [vmem:[#allocation2 + $0x40] sm:$0xff]  ;;  %vm3789_vm4 = vnez %v3669_v1 }
 0x221   : > { %v946_v5 = vmul.f32 0.6931472, %v1902_v41  ;;  %v1022_v11 = vsub.f32 %v990_v15, %v656_v20  ;;  %v1376_v20 = vsel %vm3790_vm11, %v1337_v61, 0.0  ;;  %v1090_v15 = vld [vmem:[#allocation2 + $0xa8] sm:$0xff]  ;;  %v1343_v62 = vld [vmem:[#allocation2 + $0x70] sm:$0xff]  ;;  %vm3801_vm11 = vmmov %vm3751_vm0 }
 0x222   : > { %1150 = vst.msk [vmem:[#allocation2 + $0x80] sm:$0xff] %vm3780_vm3, %v1117_v56  ;;  %v890_v40 = vpop.xlane.xlu1 %889  ;;  %v658_v47 = vpop.xlane.xlu0 %657  ;;  %v1377_v56 = vadd.f32 %v1376_v20, %v1375_v0  ;;  %vm3791_vm3 = vmmov %vm3751_vm0 }
 0x223   : > { %v1054_v46 = vsel %vm3781_vm1, %v1022_v11, 0.0  ;;  %1909 = vlog2.f32 %v890_v40  ;;  %v991_v37 = vadd.f32 %v946_v5, %v2427_v53  ;;  %vm3792_vm1 = vnez %v3672_v12 }
 0x224   : > { %v1904_v54 = vpop.eup %1903  ;;  %v1118_v59 = vadd.f32 %v1086_v43, %v1054_v46 }
 0x225   : > { %v948_v29 = vmul.f32 0.6931472, %v1904_v54  ;;  %v1023_v51 = vsub.f32 %v991_v37, %v658_v47  ;;  %v1091_v47 = vld [vmem:[#allocation2 + $0xb0] sm:$0xff]  ;;  %v1379_v37 = vadd.f32 %v1378_v36, %v1377_v56  ;;  %v1344_v22 = vld [vmem:[#allocation2 + $0x78] sm:$0xff] }
 0x226   : > { %1151 = vst.msk [vmem:[#allocation2 + $0x88] sm:$0xff] %vm3783_vm6, %v1118_v59  ;;  %v892_v38 = vpop.xlane.xlu1 %891  ;;  %v660_v27 = vpop.xlane.xlu0 %659  ;;  %v1339_v54 = vld [vmem:[#allocation2 + $0x50] sm:$0xff]  ;;  %vm3794_vm6 = vmmov %vm3751_vm0 }
 0x227   : > { %v1055_v13 = vsel %vm3784_vm9, %v1023_v51, 0.0  ;;  %1911 = vlog2.f32 %v892_v38  ;;  %v992_v17 = vadd.f32 %v948_v29, %v2425_v48  ;;  %vm3795_vm9 = vnez %v3677_v49 }
 0x228   : > { %v1906_v53 = vpop.eup %1905  ;;  %v1119_v21 = vadd.f32 %v1087_v19, %v1055_v13  ;;  %v1380_v51 = vsel %vm3796_vm15, %v1339_v54, 0.0  ;;  %vm3807_vm15 = vmmov %vm3751_vm0 }
 0x229   : > { %v950_v4 = vmul.f32 0.6931472, %v1906_v53  ;;  %v1024_v31 = vsub.f32 %v992_v17, %v660_v27  ;;  %v1381_v38 = vadd.f32 %v1380_v51, %v1379_v37  ;;  %v1341_v27 = vld [vmem:[#allocation2 + $0x60] sm:$0xff] }
 0x22a   : > { %1152 = vst.msk [vmem:[#allocation2 + $0x90] sm:$0xff] %vm3786_vm7, %v1119_v21  ;;  %v894_v14 = vpop.xlane.xlu1 %893  ;;  %v662_v7 = vpop.xlane.xlu0 %661  ;;  %vm3797_vm7 = vmmov %vm3751_vm0  ;;  %v1384_v25 = vsel %vm3751_vm0, %v1341_v27, 0.0 }
 0x22b   : > { %v1056_v52 = vsel %vm3787_vm14, %v1024_v31, 0.0  ;;  %v993_v2 = vadd.f32 %v950_v4, %v2433_v44  ;;  %vm3798_vm14 = vmmov %vm3751_vm0 }
 0x22c   : > { %v1908_v60 = vpop.eup %1907  ;;  %v1120_v48 = vadd.f32 %v1088_v58, %v1056_v52 }
 0x22d   : > { %v952_v24 = vmul.f32 0.6931472, %v1908_v60  ;;  %v1025_v23 = vsub.f32 %v993_v2, %v662_v7  ;;  %v1094_v2 = vld [vmem:[#allocation2 + $0xc8] sm:$0xff] }
 0x22e   : > { %1153 = vst.msk [vmem:[#allocation2 + $0x98] sm:$0xff] %vm3751_vm0, %v1120_v48  ;;  %v896_v26 = vpop.xlane.xlu1 %895  ;;  %v664_v8 = vpop.xlane.xlu0 %663 }
 0x22f   : > { %v1057_v3 = vsel %vm3789_vm4, %v1025_v23, 0.0  ;;  %1913 = vlog2.f32 %v896_v26  ;;  %v994_v18 = vadd.f32 %v952_v24, %v2430_v33  ;;  %vm3800_vm4 = vmmov %vm3751_vm0 }
 0x230   : > { %v1910_v44 = vpop.eup %1909  ;;  %v1121_v32 = vadd.f32 %v1089_v9, %v1057_v3  ;;  %1915 = vlog2.f32 %v894_v14  ;;  %v1345_v9 = vld [vmem:[#allocation2 + $0x80] sm:$0xff] }
 0x231   : > { %v954_v28 = vmul.f32 0.6931472, %v1910_v44  ;;  %v1026_v41 = vsub.f32 %v994_v18, %v664_v8  ;;  %v1346_v8 = vld [vmem:[#allocation2 + $0x88] sm:$0xff] }
 0x232   : > { %1154 = vst.msk [vmem:[#allocation2 + $0xa0] sm:$0xff] %vm3791_vm3, %v1121_v32  ;;  %v898_v5 = vpop.xlane.xlu1 %897  ;;  %v666_v43 = vpop.xlane.xlu0 %665  ;;  %vm3802_vm3 = vmmov %vm3751_vm0  ;;  %v1394_v56 = vsel %vm3807_vm15, %v1346_v8, 0.0  ;;  %v1097_v8 = vld [vmem:[#allocation2 + $0xe0] sm:$0xff] }
 0x233   : > { %v1058_v1 = vsel %vm3792_vm1, %v1026_v41, 0.0  ;;  %v995_v11 = vadd.f32 %v954_v28, %v2435_v34  ;;  %v1340_v34 = vld [vmem:[#allocation2 + $0x58] sm:$0xff]  ;;  %v1388_v48 = vsel %vm3802_vm3, %v1343_v62, 0.0  ;;  %vm3803_vm1 = vnez %v3686_v10  ;;  %vm3817_vm3 = vmmov %vm3751_vm0 }
 0x234   : > { %v1912_v39 = vpop.eup %1911  ;;  %v1122_v33 = vadd.f32 %v1090_v15, %v1058_v1  ;;  %v1382_v17 = vsel %vm3798_vm14, %v1340_v34, 0.0  ;;  %v1347_v15 = vld [vmem:[#allocation2 + $0x90] sm:$0xff]  ;;  %vm3810_vm14 = vnez %v3698_v55  ;;  %vm3825_vm15 = vmmov %vm3751_vm0 }
 0x235   : > { %v956_v40 = vmul.f32 0.6931472, %v1912_v39  ;;  %v1027_v46 = vsub.f32 %v995_v11, %v666_v43  ;;  %v1383_v58 = vadd.f32 %v1382_v17, %v1381_v38  ;;  %v1096_v11 = vld [vmem:[#allocation2 + $0xd8] sm:$0xff]  ;;  %v3812_v38 = vld [vmem:[#allocation10_spill] sm:$0xff] }
 0x236   : > { %1155 = vst.msk [vmem:[#allocation2 + $0xa8] sm:$0xff] %vm3794_vm6, %v1122_v33  ;;  %v900_v59 = vpop.xlane.xlu1 %899  ;;  %v668_v19 = vpop.xlane.xlu0 %667  ;;  %vm3805_vm6 = vmmov %vm3751_vm0  ;;  %v3808_v33 = vld [vmem:[#allocation37_spill] sm:$0xff] }
 0x237   : > { %v1059_v45 = vsel %vm3795_vm9, %v1027_v46, 0.0  ;;  %1917 = vlog2.f32 %v900_v59  ;;  %v996_v12 = vadd.f32 %v956_v40, %v2437_v50  ;;  %v1342_v50 = vld [vmem:[#allocation2 + $0x68] sm:$0xff]  ;;  %v1385_v52 = vadd.f32 %v1384_v25, %v1383_v58  ;;  %vm3806_vm9 = vmmov %vm3751_vm0  ;;  %v1093_v59 = vld [vmem:[#allocation2 + $0xc0] sm:$0xff] }
 0x238   : > { %v1123_v29 = vadd.f32 %v1091_v47, %v1059_v45  ;;  %1919 = vlog2.f32 %v898_v5  ;;  %v1386_v14 = vsel %vm3801_vm11, %v1342_v50, 0.0  ;;  %v1392_v32 = vsel %vm3805_vm6, %v1345_v9, 0.0  ;;  %v1348_v5 = vld [vmem:[#allocation2 + $0x98] sm:$0xff]  ;;  %vm3815_vm11 = vmmov %vm3751_vm0 }
 0x239   : > { %v1028_v63 = vsub.f32 %v996_v12, %v668_v19  ;;  %v1387_v23 = vadd.f32 %v1386_v14, %v1385_v52  ;;  %v1349_v40 = vld [vmem:[#allocation2 + $0xa0] sm:$0xff]  ;;  %v1098_v52 = vld [vmem:[#allocation2 + $0xe8] sm:$0xff]  ;;  %vm3822_vm6 = vmmov %vm3751_vm0 }
 0x23a   : > { %1156 = vst.msk [vmem:[#allocation2 + $0xb0] sm:$0xff] %vm3797_vm7, %v1123_v29  ;;  %v902_v13 = vpop.xlane.xlu1 %901  ;;  %v672_v7 = vpop.xlane.xlu0 %671  ;;  %vm3809_vm7 = vmmov %vm3751_vm0  ;;  %v1400_v51 = vsel %vm3751_vm0, %v1349_v40, 0.0 }
 0x23b   : > { %v1060_v49 = vsel %vm3799_vm10, %v1028_v63, 0.0  ;;  %1921 = vlog2.f32 %v902_v13  ;;  %v1389_v3 = vadd.f32 %v1388_v48, %v1387_v23  ;;  %v1396_v47 = vsel %vm3809_vm7, %v1347_v15, 0.0  ;;  %vm3811_vm10 = vmmov %vm3751_vm0  ;;  %v3814_v13 = vld [vmem:[#allocation38_spill] sm:$0xff] }
 0x23c   : > { %v1914_v53 = vpop.eup %1913  ;;  %v1124_v21 = vadd.f32 %v1092_v35, %v1060_v49  ;;  %v1398_v12 = vsel %vm3811_vm10, %v1348_v5, 0.0  ;;  %vm3828_vm7 = vmmov %vm3751_vm0 }
 0x23d   : > { %v960_v4 = vmul.f32 0.6931472, %v1914_v53  ;;  %v1916_v16 = vpop.eup %1915  ;;  %v1350_v49 = vld [vmem:[#allocation2 + $0xa8] sm:$0xff]  ;;  %vm3835_vm10 = vmmov %vm3751_vm0 }
 0x23e   : > { %1157 = vst.msk [vmem:[#allocation2 + $0xb8] sm:$0xff] %vm3800_vm4, %v1124_v21  ;;  %v904_v31 = vpop.xlane.xlu1 %903  ;;  %v958_v18 = vmul.f32 0.6931472, %v1916_v16  ;;  %v676_v57 = vpop.xlane.xlu0 %675  ;;  %vm3813_vm4 = vnez %v3812_v38  ;;  %v3816_v21 = vld [vmem:[#allocation41_spill] sm:$0xff]  ;;  %v3821_v16 = vld [vmem:[#allocation40_spill] sm:$0xff] }
 0x23f   : > { %v998_v42 = vadd.f32 %v960_v4, %v2441_v30  ;;  %1923 = vlog2.f32 %v904_v31  ;;  %v1390_v30 = vsel %vm3804_vm13, %v1344_v22, 0.0  ;;  %v1095_v4 = vld [vmem:[#allocation2 + $0xd0] sm:$0xff] }
 0x240   : > { %v1391_v41 = vadd.f32 %v1390_v30, %v1389_v3  ;;  %v997_v36 = vadd.f32 %v958_v18, %v3808_v33 }
 0x241   : > { %v1030_v60 = vsub.f32 %v998_v42, %v672_v7  ;;  %v1351_v31 = vld [vmem:[#allocation2 + $0xb0] sm:$0xff] }
 0x242   : > { %v906_v24 = vpop.xlane.xlu1 %905  ;;  %v1393_v43 = vadd.f32 %v1392_v32, %v1391_v41  ;;  %v680_v42 = vpop.xlane.xlu0 %679  ;;  %v1404_v30 = vsel %vm3822_vm6, %v1351_v31, 0.0 }
 0x243   : > { %v1062_v0 = vsel %vm3803_vm1, %v1030_v60, 0.0  ;;  %1925 = vlog2.f32 %v906_v24  ;;  %vm3818_vm1 = vmmov %vm3751_vm0  ;;  %v3819_v60 = vld [vmem:[#allocation22_spill] sm:$0xff] }
 0x244   : > { %v1918_v61 = vpop.eup %1917  ;;  %v1126_v26 = vadd.f32 %v1094_v2, %v1062_v0  ;;  %v1395_v54 = vadd.f32 %v1394_v56, %v1393_v43  ;;  %v1402_v7 = vsel %vm3818_vm1, %v1350_v49, 0.0  ;;  %vm3820_vm13 = vnez %v3819_v60  ;;  %vm3841_vm1 = vmmov %vm3751_vm0 }
 0x245   : > { %v964_v44 = vmul.f32 0.6931472, %v1918_v61  ;;  %v1920_v20 = vpop.eup %1919  ;;  %v1352_v9 = vld [vmem:[#allocation2 + $0xb8] sm:$0xff] }
 0x246   : > { %1159 = vst.msk [vmem:[#allocation2 + $0xc8] sm:$0xff] %vm3806_vm9, %v1126_v26  ;;  %v908_v28 = vpop.xlane.xlu1 %907  ;;  %v962_v1 = vmul.f32 0.6931472, %v1920_v20  ;;  %v1397_v19 = vadd.f32 %v1396_v47, %v1395_v54  ;;  %vm3824_vm9 = vmmov %vm3751_vm0  ;;  %v1406_v20 = vsel %vm3825_vm15, %v1352_v9, 0.0  ;;  %v1100_v54 = vld [vmem:[#allocation2 + $0xf8] sm:$0xff] }
 0x247   : > { %v1000_v10 = vadd.f32 %v964_v44, %v3618_v6  ;;  %1927 = vlog2.f32 %v908_v28 }
 0x248   : > { %v1922_v46 = vpop.eup %1921  ;;  %v999_v17 = vadd.f32 %v962_v1, %v3814_v13  ;;  %v1399_v50 = vadd.f32 %v1398_v12, %v1397_v19  ;;  %v3829_v1 = vld [vmem:[#allocation43_spill] sm:$0xff] }
 0x249   : > { %v1032_v39 = vsub.f32 %v1000_v10, %v676_v57  ;;  %v966_v35 = vmul.f32 0.6931472, %v1922_v46  ;;  %v3827_v10 = vld [vmem:[#allocation42_spill] sm:$0xff]  ;;  %v684_v46 = vpop.xlane.xlu0 %683 }
 0x24a   : > { %v670_v37 = vpop.xlane.xlu1 %669  ;;  %v1401_v14 = vadd.f32 %v1400_v51, %v1399_v50 }
 0x24b   : > { %v1064_v6 = vsel %vm3810_vm14, %v1032_v39, 0.0  ;;  %v1029_v45 = vsub.f32 %v997_v36, %v670_v37  ;;  %v1001_v24 = vadd.f32 %v966_v35, %v3821_v16  ;;  %v1099_v39 = vld [vmem:[#allocation2 + $0xf0] sm:$0xff]  ;;  %vm3831_vm14 = vmmov %vm3751_vm0 }
 0x24c   : > { %v1924_v34 = vpop.eup %1923  ;;  %v1128_v29 = vadd.f32 %v1096_v11, %v1064_v6  ;;  %v1403_v18 = vadd.f32 %v1402_v7, %v1401_v14 }
 0x24d   : > { %v968_v63 = vmul.f32 0.6931472, %v1924_v34  ;;  %v1061_v27 = vsel %vm3813_vm4, %v1029_v45, 0.0  ;;  %v1354_v40 = vld [vmem:[#allocation2 + $0xc8] sm:$0xff]  ;;  %vm3836_vm4 = vmmov %vm3751_vm0 }
 0x24e   : > { %1161 = vst.msk [vmem:[#allocation2 + $0xd8] sm:$0xff] %vm3815_vm11, %v1128_v29  ;;  %v1125_v55 = vadd.f32 %v1093_v59, %v1061_v27  ;;  %v674_v53 = vpop.xlane.xlu1 %673  ;;  %v1405_v57 = vadd.f32 %v1404_v30, %v1403_v18  ;;  %vm3837_vm11 = vmmov %vm3751_vm0 }
 0x24f   : > { %v1002_v25 = vadd.f32 %v968_v63, %v3816_v21  ;;  %v1031_v58 = vsub.f32 %v999_v17, %v674_v53 }
 0x250   : > { %v1926_v62 = vpop.eup %1925  ;;  %1158 = vst.msk [vmem:[#allocation2 + $0xc0] sm:$0xff] %vm3817_vm3, %v1125_v55  ;;  %v1407_v47 = vadd.f32 %v1406_v20, %v1405_v57  ;;  %vm3840_vm3 = vmmov %vm3751_vm0 }
 0x251   : > { %v970_v22 = vmul.f32 0.6931472, %v1926_v62  ;;  %v1034_v2 = vsub.f32 %v1002_v25, %v680_v42  ;;  %v1063_v48 = vsel %vm3820_vm13, %v1031_v58, 0.0 }
 0x252   : > { %v1127_v23 = vadd.f32 %v1095_v4, %v1063_v48  ;;  %v678_v0 = vpop.xlane.xlu1 %677 }
 0x253   : > { %v1066_v26 = vsel %vm3172_vm5, %v1034_v2, 0.0  ;;  %v1033_v3 = vsub.f32 %v1001_v24, %v678_v0  ;;  %v1003_v56 = vadd.f32 %v970_v22, %v3827_v10  ;;  %vm3830_vm5 = vmmov %vm3751_vm0 }
 0x254   : > { %v1928_v44 = vpop.eup %1927  ;;  %v1130_v32 = vadd.f32 %v1098_v52, %v1066_v26  ;;  %1160 = vst.msk [vmem:[#allocation2 + $0xd0] sm:$0xff] %vm3824_vm9, %v1127_v23 }
 0x255   : > { %v972_v28 = vmul.f32 0.6931472, %v1928_v44  ;;  %v1065_v41 = vsel %vm3163_vm12, %v1033_v3, 0.0  ;;  %vm3833_vm12 = vmmov %vm3751_vm0  ;;  %v1356_v63 = vld [vmem:[#allocation2 + $0xd8] sm:$0xff] }
 0x256   : > { %1163 = vst.msk [vmem:[#allocation2 + $0xe8] sm:$0xff] %vm3828_vm7, %v1130_v32  ;;  %v1129_v5 = vadd.f32 %v1097_v8, %v1065_v41  ;;  %v682_v43 = vpop.xlane.xlu1 %681  ;;  %v1410_v29 = vsel %vm3833_vm12, %v1354_v40, 0.0  ;;  %v1414_v49 = vsel %vm3837_vm11, %v1356_v63, 0.0 }
 0x257   : > { %v1004_v11 = vadd.f32 %v972_v28, %v3829_v1  ;;  %v1035_v33 = vsub.f32 %v1003_v56, %v682_v43  ;;  %v1353_v36 = vld [vmem:[#allocation2 + $0xc0] sm:$0xff] }
 0x258   : > { %1162 = vst.msk [vmem:[#allocation2 + $0xe0] sm:$0xff] %vm3830_vm5, %v1129_v5  ;;  %v1408_v37 = vsel %vm3831_vm14, %v1353_v36, 0.0 }
 0x259   : > { %v1036_v6 = vsub.f32 %v1004_v11, %v684_v46  ;;  %v1067_v45 = vsel %vm3187_vm8, %v1035_v33, 0.0  ;;  %v1409_v12 = vadd.f32 %v1408_v37, %v1407_v47  ;;  %vm3838_vm8 = vmmov %vm3751_vm0 }
 0x25a   : > { %v1131_v34 = vadd.f32 %v1099_v39, %v1067_v45 }
 0x25b   : > { %v1068_v51 = vsel %vm3199_vm2, %v1036_v6, 0.0  ;;  %v1355_v35 = vld [vmem:[#allocation2 + $0xd0] sm:$0xff]  ;;  %v1411_v38 = vadd.f32 %v1410_v29, %v1409_v12  ;;  %vm3839_vm2 = vmmov %vm3751_vm0 }
 0x25c   : > { %v1132_v27 = vadd.f32 %v1100_v54, %v1068_v51  ;;  %1164 = vst.msk [vmem:[#allocation2 + $0xf0] sm:$0xff] %vm3835_vm10, %v1131_v34  ;;  %v1412_v13 = vsel %vm3751_vm0, %v1355_v35, 0.0 }
 0x25d   : > { %v1413_v17 = vadd.f32 %v1412_v13, %v1411_v38  ;;  %v1358_v53 = vld [vmem:[#allocation2 + $0xe8] sm:$0xff] }
 0x25e   : > { %1165 = vst.msk [vmem:[#allocation2 + $0xf8] sm:$0xff] %vm3836_vm4, %v1132_v27  ;;  %v1418_v4 = vsel %vm3839_vm2, %v1358_v53, 0.0 }
 0x25f   : > { %v1357_v55 = vld [vmem:[#allocation2 + $0xe0] sm:$0xff]  ;;  %v1415_v50 = vadd.f32 %v1414_v49, %v1413_v17 }
 0x260   : > { %v1416_v21 = vsel %vm3838_vm8, %v1357_v55, 0.0 }
 0x261   : > { %v1417_v25 = vadd.f32 %v1416_v21, %v1415_v50 }
 0x263   : > { %v1359_v58 = vld [vmem:[#allocation2 + $0xf0] sm:$0xff]  ;;  %v1419_v31 = vadd.f32 %v1418_v4, %v1417_v25 }
 0x264   : > { %v1420_v62 = vsel %vm3840_vm3, %v1359_v58, 0.0 }
 0x265   : > { %v1360_v42 = vld [vmem:[#allocation2 + $0xf8] sm:$0xff]  ;;  %v1421_v14 = vadd.f32 %v1420_v62, %v1419_v31 }
 0x266   : > { %v1422_v7 = vsel %vm3841_vm1, %v1360_v42, 0.0 }
 0x267   : > { %v1423_v22 = vadd.f32 %v1422_v7, %v1421_v14 }
 0x269   : > { %1424 = vadd.xlane.f32.xlu1 %v1423_v22 }
 0x26e   : > { %v1531_v52 = vpop.xlane.xlu0 %1530 }
 0x26f   : > { %v1532_v2 = vrot.slane %v1531_v52, 4 }
 0x271   : > { %v1533_v60 = vadd.f32 %v1532_v2, %v1531_v52 }
 0x273   : > { %v1534_v48 = vrot.slane %v1533_v60, 2 }
 0x275   : > { %v1535_v23 = vadd.f32 %v1534_v48, %v1533_v60 }
 0x277   : > { %v1536_v61 = vrot.slane %v1535_v23, 1 }
 0x279   : > { %v1537_v3 = vadd.f32 %v1536_v61, %v1535_v23 }
 0x2f2   : > { %v1425_v16 = vpop.xlane.xlu1 %1424 }
 0x2f3   : > { %v1426_v24 = vrot.slane %v1425_v16, 4 }
 0x2f5   : > { %v1427_v9 = vadd.f32 %v1426_v24, %v1425_v16 }
 0x2f7   : > { %v1428_v0 = vrot.slane %v1427_v9, 2 }
 0x2f9   : > { %v1429_v30 = vadd.f32 %v1428_v0, %v1427_v9 }
 0x2fb   : > { %v1430_v26 = vrot.slane %v1429_v30, 1 }
 0x2fd   : > { %v1431_v8 = vadd.f32 %v1430_v26, %v1429_v30 }
 0x2ff   : > { %1733 = vpush %v1431_v8 }
 0x300   : > { %1735 = vpush %v1537_v3 }
 0x330   : > { %s1734_s27 = spop %1733 }
 0x331   : > { %v1433_v18 = vstv %s1734_s27  ;;  %s1736_s28 = spop %1735 }
 0x332   : > { %1434 = vst [vmem:[%s206_s11] sm:$0xff] %v1433_v18  ;;  %v1539_v44 = vstv %s1736_s28 }
 0x333   : > { %1540 = vst [vmem:[%s213_s9] sm:$0xff] %v1539_v44 }
 0x334   : > { %1966 = shalt.err (!%p1963_p5)
}
 0x335   : > { %s1967_s9 = scalar_lea.hbm %s3389_s26, 128  ;;  %s1971_s23 = scalar_lea.hbm %s3464_s2, 256 }
 0x336   : > { %p1968_p6 = scmp.ne.s32.totalorder %s3389_s26, %s1967_s9  ;;  %p1972_p10 = scmp.lt.s32.totalorder %s3389_s26, %s3464_s2 }
 0x337   : > { %p1973_p11 = scmp.lt.s32.totalorder %s1971_s23, %s1967_s9 }
 0x338   : > { %p1969_p7 = pnand %p1968_p6, %p2125_p4 }
 0x339   : > { %p1974_p12 = por %p1973_p11, %p1972_p10 }
 0x33a   : > { %p1970_p9 = pneg %p1969_p7 }
 0x33c   : > { %p1975_p13 = pnand %p1974_p12, %p1970_p9 }
 0x33e   : > { %1978 = shalt.err (!%p1975_p13)
}
 0x33f   : > { %1737 = dma.vmem_to_hbm [thread:$0]  (%p2125_p4), %s3391_s18, 128, %s3389_s26, %s1542_s15  }
 0x340   : > { %s1547_s29 = scalar_lea.sflag [#allocation7], %s3380_s7  ;;  %s1979_s30 = scalar_lea.vmem %s3384_s10, 128 }
 0x341   : > { %p1980_p0 = scmp.ne.s32.totalorder %s3384_s10, %s1979_s30  ;;  %s2064_s5 = smov [#allocation6]  }
 0x342   : > { %s1983_s6 = sshll.u32 %s2064_s5, 4  ;;  %s1984_s6 = int_to_ptr.vmem [resolvable:$false] %s1983_s6 }
 0x343   : > { %p1981_p1 = pnand %p1980_p0, %p2125_p4  ;;  %s1985_s8 = scalar_lea.vmem %s1984_s6, 256 }
 0x344   : > { %p1986_p3 = scmp.lt.s32.totalorder %s3384_s10, %s1984_s6  ;;  %p1987_p5 = scmp.lt.s32.totalorder %s1985_s8, %s1979_s30 }
 0x345   : > { %p1982_p2 = pneg %p1981_p1 }
 0x346   : > { %p1988_p6 = por %p1987_p5, %p1986_p3 }
 0x348   : > { %p1989_p7 = pnand %p1988_p6, %p1982_p2 }
 0x34a   : > { %1992 = shalt.err (!%p1989_p7)
}
 0x34b   : > { %s1993_s18 = scalar_lea.hbm %s3396_s4, 128  ;;  %s1997_s15 = scalar_lea.hbm %s3465_s3, 256 }
 0x34c   : > { %p1994_p9 = scmp.ne.s32.totalorder %s3396_s4, %s1993_s18  ;;  %p1998_p12 = scmp.lt.s32.totalorder %s3396_s4, %s3465_s3 }
 0x34d   : > { %p1999_p13 = scmp.lt.s32.totalorder %s1997_s15, %s1993_s18 }
 0x34e   : > { %p1995_p10 = pnand %p1994_p9, %p2125_p4 }
 0x34f   : > { %p2000_p0 = por %p1999_p13, %p1998_p12 }
 0x350   : > { %p1996_p11 = pneg %p1995_p10 }
 0x352   : > { %p2001_p1 = pnand %p2000_p0, %p1996_p11 }
 0x354   : > { %2004 = shalt.err (!%p2001_p1)
}
 0x355   : > { %1738 = dma.vmem_to_hbm [thread:$0]  (%p2125_p4), %s3384_s10, 128, %s3396_s4, %s1547_s29  }
 0x356 PF: > { %p1748_p2 = scmp.ge.s32.totalorder %s2059_s17, 2  ;;  %s1585_s11 = sand.u32 1, %s2039_s12  }
 0x357   : > { %s1586_s19 = scalar_lea.sflag [#allocation5], %s1585_s11 }
 0x358   : > { %p1742_p3 = pnand %p1748_p2, %p2132_p8 }
 0x35a   : > { %p1743_p5 = pneg %p1742_p3 }
 0x35c   : > { %2030 = dma.done.wait (%p1743_p5), %s1586_s19, 128  }
 0x35d   : > { %2032 = vsyncadd (%p1743_p5), %s1586_s19, 4294967168  ;;  %s1595_s23 = scalar_lea.sflag [#allocation7], %s1585_s11 }
 0x35e   : > { %2034 = dma.done.wait (%p1743_p5), %s1595_s23, 128  }
 0x35f   : > { %2036 = vsyncadd (%p1743_p5), %s1595_s23, 4294967168  ;;  %s20_s17 = sadd.s32 1, %s2059_s17   ;;  %s3842_s12 = smov %s2043_s13 }
 0x360   : > { %p17_p6 = scmp.ge.s32.totalorder %s20_s17, 4   ;;  %s3843_s13 = smov %s2047_s14 }
 0x361   : > { %s3844_s14 = smov %s2138_s25  ;;  %s3845_s15 = smov %s2055_s16 }
 0x362   : > { %s3846_s16 = smov %s3848_s20  ;;  %19 = sbr.rel (!%p17_p6) target bundleno = 6 (0x6), region = 91 }
 0x367   :  { %1600 = vsyncpa [#allocation5], 1 }
 0x368   :  { %1602 = vsyncpa [#allocation5 + $0x1], 1 }
 0x369   :  { %1603 = vsyncpa [#allocation7], 1 }
 0x36a   :  { %1605 = vsyncpa [#allocation7 + $0x1], 1 }

</bundles_post_ra>
